<compile_context>
chip_gen: v6e
topology: v6e:2x2x1
jax: 0.10.0
libtpu: 0.0.40
codegen_flags: <defaults>
</compile_context>

<pallas_src>
import functools

import jax
import jax.numpy as jnp
from jax.experimental import pallas as pl
from jax.experimental.pallas import tpu as pltpu

EPS = 1e-5  # PyTorch nn.LayerNorm default eps


# ----------------------------- in-kernel helpers -----------------------------
def _layernorm(x, g, b):
    mean = jnp.mean(x, axis=-1, keepdims=True)
    var = jnp.mean((x - mean) ** 2, axis=-1, keepdims=True)
    return (x - mean) * jax.lax.rsqrt(var + EPS) * g + b


def _gelu(x):
    # TODO(synk): PyTorch nn.GELU() defaults to exact erf GELU; the tanh
    # approximation is used in-kernel (Mosaic-safe transcendentals, ~1e-3 diff).
    c = 0.7978845608028654  # sqrt(2/pi)
    return 0.5 * x * (1.0 + jnp.tanh(c * (x + 0.044715 * x * x * x)))


def _mm_bf16(a_f32, w_bf16):
    # MXU matmul: bf16 operands, f32 accumulation.
    return jnp.dot(a_f32.astype(jnp.bfloat16), w_bf16,
                   preferred_element_type=jnp.float32)


# --------------------------------- fused kernel -------------------------------
def vit_fused_kernel(p_ref,
                     pe_ln1g, pe_ln1b, pe_w, pe_b, pe_ln2g, pe_ln2b, pos_ref,
                     a_lng, a_lnb, a_wqkv, a_wo, a_bo,
                     f_lng, f_lnb, f_w1, f_b1, f_w2, f_b2,
                     ng, nb, n2g, n2b,
                     o_ref, *, depth, heads, dim_head):
    """Entire ViT forward for one batch element (one grid step)."""
    inner = heads * dim_head

    # ---- patch embedding: LN(P) -> Linear(P, D) -> LN(D) -> + pos ----
    x = p_ref[0]                                                  # (N, P) f32
    y = _layernorm(x, pe_ln1g[...], pe_ln1b[...])
    h = _mm_bf16(y, pe_w[...]) + pe_b[...]
    h = _layernorm(h, pe_ln2g[...], pe_ln2b[...])
    x = h + pos_ref[...]                                          # (N, D)
    # emb dropout p=0.0 -> identity

    # ---- transformer layers (static unroll; depth is small) ----
    for l in range(depth):
        # --- pre-LN multi-head self-attention + residual ---
        y = _layernorm(x, a_lng[l], a_lnb[l])
        qkv = _mm_bf16(y, a_wqkv[l])                              # (N, 3*inner) f32
        # NOTE: 1/sqrt(dim_head) is pre-folded into the q columns of wqkv.
        q = qkv[:, 0:inner].astype(jnp.bfloat16)
        k = qkv[:, inner:2 * inner].astype(jnp.bfloat16)
        v = qkv[:, 2 * inner:3 * inner].astype(jnp.bfloat16)
        wo = a_wo[l]                                              # (inner, D) bf16

        attn_out = None
        for hh in range(heads):                                   # static unroll
            s = hh * dim_head
            qh = q[:, s:s + dim_head]
            kh = k[:, s:s + dim_head]
            vh = v[:, s:s + dim_head]
            # dots = qh @ kh.T  (scale already folded into qh)
            dots = jax.lax.dot_general(qh, kh, (((1,), (1,)), ((), ())),
                                       preferred_element_type=jnp.float32)
            dots = dots - jnp.max(dots, axis=-1, keepdims=True)
            e = jnp.exp(dots)
            attn = e * pl.reciprocal(jnp.sum(e, axis=-1, keepdims=True),
                                     approx=True)
            oh = jnp.dot(attn.astype(jnp.bfloat16), vh,
                         preferred_element_type=jnp.float32)      # (N, dh)
            # Fold the "concat over heads" into the output projection:
            zh = jnp.dot(oh.astype(jnp.bfloat16), wo[s:s + dim_head, :],
                         preferred_element_type=jnp.float32)      # (N, D)
            attn_out = zh if attn_out is None else attn_out + zh
        x = x + attn_out + a_bo[l]                                # residual + out bias

        # --- pre-LN MLP (Linear -> GELU -> Linear) + residual ---
        y = _layernorm(x, f_lng[l], f_lnb[l])
        hd = _mm_bf16(y, f_w1[l]) + f_b1[l]
        hd = _gelu(hd)
        x = x + _mm_bf16(hd, f_w2[l]) + f_b2[l]

    # ---- Transformer.norm followed by ViT.norm2 ----
    y = _layernorm(x, ng[...], nb[...])
    y = _layernorm(y, n2g[...], n2b[...])
    o_ref[0] = y


# ------------------------------- pallas wrapper -------------------------------
def _const_spec(p):
    nd = p.ndim
    return pl.BlockSpec(p.shape, lambda b, nd=nd: (0,) * nd)


def vit_forward(img, params, *, patch_size, heads, dim_head):
    B, C, H, W = img.shape
    p1 = p2 = patch_size

    # Rearrange 'b c (h p1) (w p2) -> b (h w) (p1 p2 c)'  (plain-JAX glue)
    x = img.reshape(B, C, H // p1, p1, W // p2, p2)
    x = x.transpose(0, 2, 4, 3, 5, 1)                    # b, h, w, p1, p2, c
    patches = x.reshape(B, (H // p1) * (W // p2), p1 * p2 * C)
    N, P = patches.shape[1], patches.shape[2]

    pe = params["patch_embed"]
    D = pe["w"].shape[1]
    depth = len(params["layers"])
    inner = heads * dim_head
    scale = float(dim_head) ** -0.5
    bf16 = lambda a: a.astype(jnp.bfloat16)

    def stack(block, name):
        return jnp.stack([params["layers"][l][block][name] for l in range(depth)],
                         axis=0)

    # Fold the attention scale into the q columns of the QKV weight (once).
    a_wqkv = stack("attn", "wqkv")
    a_wqkv = a_wqkv.at[:, :, :inner].multiply(scale)

    operands = [
        patches,
        pe["ln1_g"], pe["ln1_b"], bf16(pe["w"]), pe["b"], pe["ln2_g"], pe["ln2_b"],
        params["pos"][:N],                               # pos_embedding[:, :n]
        stack("attn", "ln_g"), stack("attn", "ln_b"), bf16(a_wqkv),
        bf16(stack("attn", "wo")), stack("attn", "bo"),
        stack("ffn", "ln_g"), stack("ffn", "ln_b"),
        bf16(stack("ffn", "w1")), stack("ffn", "b1"),
        bf16(stack("ffn", "w2")), stack("ffn", "b2"),
        params["norm_g"], params["norm_b"], params["norm2_g"], params["norm2_b"],
    ]

    kernel = functools.partial(vit_fused_kernel, depth=depth, heads=heads,
                               dim_head=dim_head)
    out = pl.pallas_call(
        kernel,
        out_shape=jax.ShapeDtypeStruct((B, N, D), jnp.float32),
        grid=(B,),
        in_specs=[pl.BlockSpec((1, N, P), lambda b: (b, 0, 0))]
                 + [_const_spec(q) for q in operands[1:]],
        out_specs=pl.BlockSpec((1, N, D), lambda b: (b, 0, 0)),
        compiler_params=pltpu.CompilerParams(dimension_semantics=("parallel",)),
    )(*operands)

    # x_vis = norm2(x).view(b, -1, 4, 4)
    return out.reshape(B, -1, 4, 4)


# --------------------------------- model init ---------------------------------
def init_params(key, *, image_size, patch_size, channels, dim, depth, heads,
                dim_head, mlp_dim):
    p = patch_size
    num_patches = (image_size // p) ** 2
    patch_dim = channels * p * p
    inner = heads * dim_head

    keys = iter(jax.random.split(key, 64))
    nrm = lambda shape, s=0.02: (jax.random.normal(next(keys), shape, jnp.float32) * s)
    ones = lambda n: jnp.ones((1, n), jnp.float32)
    zeros = lambda n: jnp.zeros((1, n), jnp.float32)

    params = {
        "patch_embed": dict(
            ln1_g=ones(patch_dim), ln1_b=zeros(patch_dim),
            w=nrm((patch_dim, dim)), b=nrm((1, dim)),
            ln2_g=ones(dim), ln2_b=zeros(dim),
        ),
        "pos": jax.random.normal(next(keys), (num_patches + 1, dim), jnp.float32),
        # cls_token is a Parameter in the PyTorch module but never used in forward()
        "cls_token": jax.random.normal(next(keys), (1, 1, dim), jnp.float32),
        "layers": [],
        "norm_g": ones(dim), "norm_b": zeros(dim),
        "norm2_g": ones(dim), "norm2_b": zeros(dim),
    }
    for _ in range(depth):
        attn = dict(ln_g=ones(dim), ln_b=zeros(dim),
                    wqkv=nrm((dim, 3 * inner)),        # to_qkv has bias=False
                    wo=nrm((inner, dim)), bo=nrm((1, dim)))
        ffn = dict(ln_g=ones(dim), ln_b=zeros(dim),
                   w1=nrm((dim, mlp_dim)), b1=nrm((1, mlp_dim)),
                   w2=nrm((mlp_dim, dim)), b2=nrm((1, dim)))
        params["layers"].append(dict(attn=attn, ffn=ffn))
    return params


# ------------------------------------ main -------------------------------------
if __name__ == "__main__":
    cfg = dict(image_size=16, patch_size=4, channels=4, dim=32,
               depth=2, heads=4, dim_head=8, mlp_dim=64)

    key = jax.random.PRNGKey(0)
    pkey, xkey = jax.random.split(key)
    params = init_params(pkey, **cfg)

    img = jax.random.normal(
        xkey, (2, cfg["channels"], cfg["image_size"], cfg["image_size"]),
        dtype=jnp.float32)

    fwd = jax.jit(functools.partial(vit_forward, patch_size=cfg["patch_size"],
                                    heads=cfg["heads"], dim_head=cfg["dim_head"]))
    out = fwd(img, params)
    out = jax.block_until_ready(out)

    # num_patches = 16, dim = 32 -> (B, 16*32/16, 4, 4) = (2, 32, 4, 4)
    assert out.shape == (2, 32, 4, 4), out.shape
    assert out.dtype == jnp.float32
    print("KERNEL_OK")
</pallas_src>

<mosaic_0001>
module attributes {stable_mosaic.version = 11 : i64} {
  func.func @vit_fused_kernel(%arg0: i32, %arg1: memref<1x16x64xf32, #tpu.memory_space<vmem>>, %arg2: memref<1x64xf32, #tpu.memory_space<vmem>>, %arg3: memref<1x64xf32, #tpu.memory_space<vmem>>, %arg4: memref<64x32xbf16, #tpu.memory_space<vmem>>, %arg5: memref<1x32xf32, #tpu.memory_space<vmem>>, %arg6: memref<1x32xf32, #tpu.memory_space<vmem>>, %arg7: memref<1x32xf32, #tpu.memory_space<vmem>>, %arg8: memref<16x32xf32, #tpu.memory_space<vmem>>, %arg9: memref<2x1x32xf32, #tpu.memory_space<vmem>>, %arg10: memref<2x1x32xf32, #tpu.memory_space<vmem>>, %arg11: memref<2x32x96xbf16, #tpu.memory_space<vmem>>, %arg12: memref<2x32x32xbf16, #tpu.memory_space<vmem>>, %arg13: memref<2x1x32xf32, #tpu.memory_space<vmem>>, %arg14: memref<2x1x32xf32, #tpu.memory_space<vmem>>, %arg15: memref<2x1x32xf32, #tpu.memory_space<vmem>>, %arg16: memref<2x32x64xbf16, #tpu.memory_space<vmem>>, %arg17: memref<2x1x64xf32, #tpu.memory_space<vmem>>, %arg18: memref<2x64x32xbf16, #tpu.memory_space<vmem>>, %arg19: memref<2x1x32xf32, #tpu.memory_space<vmem>>, %arg20: memref<1x32xf32, #tpu.memory_space<vmem>>, %arg21: memref<1x32xf32, #tpu.memory_space<vmem>>, %arg22: memref<1x32xf32, #tpu.memory_space<vmem>>, %arg23: memref<1x32xf32, #tpu.memory_space<vmem>>, %arg24: memref<1x16x32xf32, #tpu.memory_space<vmem>>) attributes {dimension_semantics = [#tpu.dimension_semantics<parallel>], iteration_bounds = array<i64: 2>, scalar_prefetch = 0 : i64, scratch_operands = 0 : i64, tpu.core_type = #tpu.core_type<tc>, window_params = [{transform_indices = @transform_0, window_bounds = array<i64: 1, 16, 64>}, {pipeline_mode = #tpu.pipeline_mode<synchronous>, transform_indices = @transform_1, window_bounds = array<i64: 1, 64>}, {pipeline_mode = #tpu.pipeline_mode<synchronous>, transform_indices = @transform_2, window_bounds = array<i64: 1, 64>}, {pipeline_mode = #tpu.pipeline_mode<synchronous>, transform_indices = @transform_3, window_bounds = array<i64: 64, 32>}, {pipeline_mode = #tpu.pipeline_mode<synchronous>, transform_indices = @transform_4, window_bounds = array<i64: 1, 32>}, {pipeline_mode = #tpu.pipeline_mode<synchronous>, transform_indices = @transform_5, window_bounds = array<i64: 1, 32>}, {pipeline_mode = #tpu.pipeline_mode<synchronous>, transform_indices = @transform_6, window_bounds = array<i64: 1, 32>}, {pipeline_mode = #tpu.pipeline_mode<synchronous>, transform_indices = @transform_7, window_bounds = array<i64: 16, 32>}, {pipeline_mode = #tpu.pipeline_mode<synchronous>, transform_indices = @transform_8, window_bounds = array<i64: 2, 1, 32>}, {pipeline_mode = #tpu.pipeline_mode<synchronous>, transform_indices = @transform_9, window_bounds = array<i64: 2, 1, 32>}, {pipeline_mode = #tpu.pipeline_mode<synchronous>, transform_indices = @transform_10, window_bounds = array<i64: 2, 32, 96>}, {pipeline_mode = #tpu.pipeline_mode<synchronous>, transform_indices = @transform_11, window_bounds = array<i64: 2, 32, 32>}, {pipeline_mode = #tpu.pipeline_mode<synchronous>, transform_indices = @transform_12, window_bounds = array<i64: 2, 1, 32>}, {pipeline_mode = #tpu.pipeline_mode<synchronous>, transform_indices = @transform_13, window_bounds = array<i64: 2, 1, 32>}, {pipeline_mode = #tpu.pipeline_mode<synchronous>, transform_indices = @transform_14, window_bounds = array<i64: 2, 1, 32>}, {pipeline_mode = #tpu.pipeline_mode<synchronous>, transform_indices = @transform_15, window_bounds = array<i64: 2, 32, 64>}, {pipeline_mode = #tpu.pipeline_mode<synchronous>, transform_indices = @transform_16, window_bounds = array<i64: 2, 1, 64>}, {pipeline_mode = #tpu.pipeline_mode<synchronous>, transform_indices = @transform_17, window_bounds = array<i64: 2, 64, 32>}, {pipeline_mode = #tpu.pipeline_mode<synchronous>, transform_indices = @transform_18, window_bounds = array<i64: 2, 1, 32>}, {pipeline_mode = #tpu.pipeline_mode<synchronous>, transform_indices = @transform_19, window_bounds = array<i64: 1, 32>}, {pipeline_mode = #tpu.pipeline_mode<synchronous>, transform_indices = @transform_20, window_bounds = array<i64: 1, 32>}, {pipeline_mode = #tpu.pipeline_mode<synchronous>, transform_indices = @transform_21, window_bounds = array<i64: 1, 32>}, {pipeline_mode = #tpu.pipeline_mode<synchronous>, transform_indices = @transform_22, window_bounds = array<i64: 1, 32>}, {transform_indices = @transform_23, window_bounds = array<i64: 1, 16, 32>}]} {
    %c0 = arith.constant 0 : index
    %c0_0 = arith.constant 0 : index
    %c0_1 = arith.constant 0 : index
    %0 = vector.load %arg1[%c0, %c0_0, %c0_1] : memref<1x16x64xf32, #tpu.memory_space<vmem>>, vector<1x16x64xf32>
    %1 = vector.shape_cast %0 : vector<1x16x64xf32> to vector<16x64xf32>
    %c0_2 = arith.constant 0 : index
    %c0_3 = arith.constant 0 : index
    %2 = vector.load %arg2[%c0_2, %c0_3] : memref<1x64xf32, #tpu.memory_space<vmem>>, vector<1x64xf32>
    %c0_4 = arith.constant 0 : index
    %c0_5 = arith.constant 0 : index
    %3 = vector.load %arg3[%c0_4, %c0_5] : memref<1x64xf32, #tpu.memory_space<vmem>>, vector<1x64xf32>
    %cst = arith.constant dense<0.000000e+00> : vector<16xf32>
    %4 = vector.multi_reduction <add>, %1, %cst [1] : vector<16x64xf32> to vector<16xf32>
    %5 = vector.shape_cast %4 : vector<16xf32> to vector<16x1xf32>
    %cst_6 = arith.constant 6.400000e+01 : f32
    %6 = vector.broadcast %cst_6 : f32 to vector<16x1xf32>
    %7 = arith.divf %5, %6 : vector<16x1xf32>
    %8 = vector.broadcast %7 : vector<16x1xf32> to vector<16x64xf32>
    %9 = arith.subf %1, %8 : vector<16x64xf32>
    %10 = arith.mulf %9, %9 : vector<16x64xf32>
    %cst_7 = arith.constant dense<0.000000e+00> : vector<16xf32>
    %11 = vector.multi_reduction <add>, %10, %cst_7 [1] : vector<16x64xf32> to vector<16xf32>
    %12 = vector.shape_cast %11 : vector<16xf32> to vector<16x1xf32>
    %cst_8 = arith.constant 6.400000e+01 : f32
    %13 = vector.broadcast %cst_8 : f32 to vector<16x1xf32>
    %14 = arith.divf %12, %13 : vector<16x1xf32>
    %15 = vector.broadcast %7 : vector<16x1xf32> to vector<16x64xf32>
    %16 = arith.subf %1, %15 : vector<16x64xf32>
    %cst_9 = arith.constant 9.99999974E-6 : f32
    %17 = vector.broadcast %cst_9 : f32 to vector<16x1xf32>
    %18 = arith.addf %14, %17 : vector<16x1xf32>
    %19 = math.rsqrt %18 : vector<16x1xf32>
    %20 = vector.broadcast %19 : vector<16x1xf32> to vector<16x64xf32>
    %21 = arith.mulf %16, %20 : vector<16x64xf32>
    %22 = vector.broadcast %2 : vector<1x64xf32> to vector<16x64xf32>
    %23 = arith.mulf %21, %22 : vector<16x64xf32>
    %24 = vector.broadcast %3 : vector<1x64xf32> to vector<16x64xf32>
    %25 = arith.addf %23, %24 : vector<16x64xf32>
    %c0_10 = arith.constant 0 : index
    %c0_11 = arith.constant 0 : index
    %26 = vector.load %arg4[%c0_10, %c0_11] : memref<64x32xbf16, #tpu.memory_space<vmem>>, vector<64x32xbf16>
    %27 = arith.truncf %25 : vector<16x64xf32> to vector<16x64xbf16>
    %cst_12 = arith.constant dense<0.000000e+00> : vector<16x32xf32>
    %28 = tpu.matmul %27, %26, %cst_12 {dimension_numbers = #tpu.dot_dimension_numbers<[1], [0], [0], [1], [0, 0, 1, 1], [], []>} : vector<16x64xbf16>, vector<64x32xbf16>, vector<16x32xf32> -> vector<16x32xf32>
    %c0_13 = arith.constant 0 : index
    %c0_14 = arith.constant 0 : index
    %29 = vector.load %arg5[%c0_13, %c0_14] : memref<1x32xf32, #tpu.memory_space<vmem>>, vector<1x32xf32>
    %30 = vector.broadcast %29 : vector<1x32xf32> to vector<16x32xf32>
    %31 = arith.addf %28, %30 : vector<16x32xf32>
    %c0_15 = arith.constant 0 : index
    %c0_16 = arith.constant 0 : index
    %32 = vector.load %arg6[%c0_15, %c0_16] : memref<1x32xf32, #tpu.memory_space<vmem>>, vector<1x32xf32>
    %c0_17 = arith.constant 0 : index
    %c0_18 = arith.constant 0 : index
    %33 = vector.load %arg7[%c0_17, %c0_18] : memref<1x32xf32, #tpu.memory_space<vmem>>, vector<1x32xf32>
    %cst_19 = arith.constant dense<0.000000e+00> : vector<16xf32>
    %34 = vector.multi_reduction <add>, %31, %cst_19 [1] : vector<16x32xf32> to vector<16xf32>
    %35 = vector.shape_cast %34 : vector<16xf32> to vector<16x1xf32>
    %cst_20 = arith.constant 3.200000e+01 : f32
    %36 = vector.broadcast %cst_20 : f32 to vector<16x1xf32>
    %37 = arith.divf %35, %36 : vector<16x1xf32>
    %38 = vector.broadcast %37 : vector<16x1xf32> to vector<16x32xf32>
    %39 = arith.subf %31, %38 : vector<16x32xf32>
    %40 = arith.mulf %39, %39 : vector<16x32xf32>
    %cst_21 = arith.constant dense<0.000000e+00> : vector<16xf32>
    %41 = vector.multi_reduction <add>, %40, %cst_21 [1] : vector<16x32xf32> to vector<16xf32>
    %42 = vector.shape_cast %41 : vector<16xf32> to vector<16x1xf32>
    %cst_22 = arith.constant 3.200000e+01 : f32
    %43 = vector.broadcast %cst_22 : f32 to vector<16x1xf32>
    %44 = arith.divf %42, %43 : vector<16x1xf32>
    %45 = vector.broadcast %37 : vector<16x1xf32> to vector<16x32xf32>
    %46 = arith.subf %31, %45 : vector<16x32xf32>
    %cst_23 = arith.constant 9.99999974E-6 : f32
    %47 = vector.broadcast %cst_23 : f32 to vector<16x1xf32>
    %48 = arith.addf %44, %47 : vector<16x1xf32>
    %49 = math.rsqrt %48 : vector<16x1xf32>
    %50 = vector.broadcast %49 : vector<16x1xf32> to vector<16x32xf32>
    %51 = arith.mulf %46, %50 : vector<16x32xf32>
    %52 = vector.broadcast %32 : vector<1x32xf32> to vector<16x32xf32>
    %53 = arith.mulf %51, %52 : vector<16x32xf32>
    %54 = vector.broadcast %33 : vector<1x32xf32> to vector<16x32xf32>
    %55 = arith.addf %53, %54 : vector<16x32xf32>
    %c0_24 = arith.constant 0 : index
    %c0_25 = arith.constant 0 : index
    %56 = vector.load %arg8[%c0_24, %c0_25] : memref<16x32xf32, #tpu.memory_space<vmem>>, vector<16x32xf32>
    %57 = arith.addf %55, %56 : vector<16x32xf32>
    %c0_26 = arith.constant 0 : index
    %c0_27 = arith.constant 0 : index
    %c0_28 = arith.constant 0 : index
    %58 = vector.load %arg9[%c0_26, %c0_27, %c0_28] : memref<2x1x32xf32, #tpu.memory_space<vmem>>, vector<1x1x32xf32>
    %59 = vector.shape_cast %58 : vector<1x1x32xf32> to vector<1x32xf32>
    %c0_29 = arith.constant 0 : index
    %c0_30 = arith.constant 0 : index
    %c0_31 = arith.constant 0 : index
    %60 = vector.load %arg10[%c0_29, %c0_30, %c0_31] : memref<2x1x32xf32, #tpu.memory_space<vmem>>, vector<1x1x32xf32>
    %61 = vector.shape_cast %60 : vector<1x1x32xf32> to vector<1x32xf32>
    %cst_32 = arith.constant dense<0.000000e+00> : vector<16xf32>
    %62 = vector.multi_reduction <add>, %57, %cst_32 [1] : vector<16x32xf32> to vector<16xf32>
    %63 = vector.shape_cast %62 : vector<16xf32> to vector<16x1xf32>
    %cst_33 = arith.constant 3.200000e+01 : f32
    %64 = vector.broadcast %cst_33 : f32 to vector<16x1xf32>
    %65 = arith.divf %63, %64 : vector<16x1xf32>
    %66 = vector.broadcast %65 : vector<16x1xf32> to vector<16x32xf32>
    %67 = arith.subf %57, %66 : vector<16x32xf32>
    %68 = arith.mulf %67, %67 : vector<16x32xf32>
    %cst_34 = arith.constant dense<0.000000e+00> : vector<16xf32>
    %69 = vector.multi_reduction <add>, %68, %cst_34 [1] : vector<16x32xf32> to vector<16xf32>
    %70 = vector.shape_cast %69 : vector<16xf32> to vector<16x1xf32>
    %cst_35 = arith.constant 3.200000e+01 : f32
    %71 = vector.broadcast %cst_35 : f32 to vector<16x1xf32>
    %72 = arith.divf %70, %71 : vector<16x1xf32>
    %73 = vector.broadcast %65 : vector<16x1xf32> to vector<16x32xf32>
    %74 = arith.subf %57, %73 : vector<16x32xf32>
    %cst_36 = arith.constant 9.99999974E-6 : f32
    %75 = vector.broadcast %cst_36 : f32 to vector<16x1xf32>
    %76 = arith.addf %72, %75 : vector<16x1xf32>
    %77 = math.rsqrt %76 : vector<16x1xf32>
    %78 = vector.broadcast %77 : vector<16x1xf32> to vector<16x32xf32>
    %79 = arith.mulf %74, %78 : vector<16x32xf32>
    %80 = vector.broadcast %59 : vector<1x32xf32> to vector<16x32xf32>
    %81 = arith.mulf %79, %80 : vector<16x32xf32>
    %82 = vector.broadcast %61 : vector<1x32xf32> to vector<16x32xf32>
    %83 = arith.addf %81, %82 : vector<16x32xf32>
    %c0_37 = arith.constant 0 : index
    %c0_38 = arith.constant 0 : index
    %c0_39 = arith.constant 0 : index
    %84 = vector.load %arg11[%c0_37, %c0_38, %c0_39] : memref<2x32x96xbf16, #tpu.memory_space<vmem>>, vector<1x32x96xbf16>
    %85 = vector.shape_cast %84 : vector<1x32x96xbf16> to vector<32x96xbf16>
    %86 = arith.truncf %83 : vector<16x32xf32> to vector<16x32xbf16>
    %cst_40 = arith.constant dense<0.000000e+00> : vector<16x96xf32>
    %87 = tpu.matmul %86, %85, %cst_40 {dimension_numbers = #tpu.dot_dimension_numbers<[1], [0], [0], [1], [0, 0, 1, 1], [], []>} : vector<16x32xbf16>, vector<32x96xbf16>, vector<16x96xf32> -> vector<16x96xf32>
    %88 = vector.extract_strided_slice %87 {offsets = [0, 0], sizes = [16, 32], strides = [1, 1]} : vector<16x96xf32> to vector<16x32xf32>
    %89 = arith.truncf %88 : vector<16x32xf32> to vector<16x32xbf16>
    %90 = vector.extract_strided_slice %87 {offsets = [0, 32], sizes = [16, 32], strides = [1, 1]} : vector<16x96xf32> to vector<16x32xf32>
    %91 = arith.truncf %90 : vector<16x32xf32> to vector<16x32xbf16>
    %92 = vector.extract_strided_slice %87 {offsets = [0, 64], sizes = [16, 32], strides = [1, 1]} : vector<16x96xf32> to vector<16x32xf32>
    %93 = arith.truncf %92 : vector<16x32xf32> to vector<16x32xbf16>
    %c0_41 = arith.constant 0 : index
    %c0_42 = arith.constant 0 : index
    %c0_43 = arith.constant 0 : index
    %94 = vector.load %arg12[%c0_41, %c0_42, %c0_43] : memref<2x32x32xbf16, #tpu.memory_space<vmem>>, vector<1x32x32xbf16>
    %95 = vector.shape_cast %94 : vector<1x32x32xbf16> to vector<32x32xbf16>
    %96 = vector.extract_strided_slice %89 {offsets = [0, 0], sizes = [16, 8], strides = [1, 1]} : vector<16x32xbf16> to vector<16x8xbf16>
    %97 = vector.extract_strided_slice %91 {offsets = [0, 0], sizes = [16, 8], strides = [1, 1]} : vector<16x32xbf16> to vector<16x8xbf16>
    %98 = vector.extract_strided_slice %93 {offsets = [0, 0], sizes = [16, 8], strides = [1, 1]} : vector<16x32xbf16> to vector<16x8xbf16>
    %cst_44 = arith.constant dense<0.000000e+00> : vector<16x16xf32>
    %99 = tpu.matmul %96, %97, %cst_44 {dimension_numbers = #tpu.dot_dimension_numbers<[1], [1], [0], [0], [0, 0, 1, 0], [], []>} : vector<16x8xbf16>, vector<16x8xbf16>, vector<16x16xf32> -> vector<16x16xf32>
    %cst_45 = arith.constant dense<0xFF800000> : vector<16xf32>
    %100 = vector.multi_reduction <maximumf>, %99, %cst_45 [1] : vector<16x16xf32> to vector<16xf32>
    %101 = vector.shape_cast %100 : vector<16xf32> to vector<16x1xf32>
    %102 = vector.broadcast %101 : vector<16x1xf32> to vector<16x16xf32>
    %103 = arith.subf %99, %102 : vector<16x16xf32>
    %104 = math.exp %103 : vector<16x16xf32>
    %cst_46 = arith.constant dense<0.000000e+00> : vector<16xf32>
    %105 = vector.multi_reduction <add>, %104, %cst_46 [1] : vector<16x16xf32> to vector<16xf32>
    %106 = vector.shape_cast %105 : vector<16xf32> to vector<16x1xf32>
    %107 = tpu.reciprocal %106 {approx = true} : vector<16x1xf32> -> vector<16x1xf32>
    %108 = vector.broadcast %107 : vector<16x1xf32> to vector<16x16xf32>
    %109 = arith.mulf %104, %108 : vector<16x16xf32>
    %110 = arith.truncf %109 : vector<16x16xf32> to vector<16x16xbf16>
    %cst_47 = arith.constant dense<0.000000e+00> : vector<16x8xf32>
    %111 = tpu.matmul %110, %98, %cst_47 {dimension_numbers = #tpu.dot_dimension_numbers<[1], [0], [0], [1], [0, 0, 1, 1], [], []>} : vector<16x16xbf16>, vector<16x8xbf16>, vector<16x8xf32> -> vector<16x8xf32>
    %112 = arith.truncf %111 : vector<16x8xf32> to vector<16x8xbf16>
    %113 = vector.extract_strided_slice %95 {offsets = [0, 0], sizes = [8, 32], strides = [1, 1]} : vector<32x32xbf16> to vector<8x32xbf16>
    %cst_48 = arith.constant dense<0.000000e+00> : vector<16x32xf32>
    %114 = tpu.matmul %112, %113, %cst_48 {dimension_numbers = #tpu.dot_dimension_numbers<[1], [0], [0], [1], [0, 0, 1, 1], [], []>} : vector<16x8xbf16>, vector<8x32xbf16>, vector<16x32xf32> -> vector<16x32xf32>
    %115 = vector.extract_strided_slice %89 {offsets = [0, 8], sizes = [16, 8], strides = [1, 1]} : vector<16x32xbf16> to vector<16x8xbf16>
    %116 = vector.extract_strided_slice %91 {offsets = [0, 8], sizes = [16, 8], strides = [1, 1]} : vector<16x32xbf16> to vector<16x8xbf16>
    %117 = vector.extract_strided_slice %93 {offsets = [0, 8], sizes = [16, 8], strides = [1, 1]} : vector<16x32xbf16> to vector<16x8xbf16>
    %cst_49 = arith.constant dense<0.000000e+00> : vector<16x16xf32>
    %118 = tpu.matmul %115, %116, %cst_49 {dimension_numbers = #tpu.dot_dimension_numbers<[1], [1], [0], [0], [0, 0, 1, 0], [], []>} : vector<16x8xbf16>, vector<16x8xbf16>, vector<16x16xf32> -> vector<16x16xf32>
    %cst_50 = arith.constant dense<0xFF800000> : vector<16xf32>
    %119 = vector.multi_reduction <maximumf>, %118, %cst_50 [1] : vector<16x16xf32> to vector<16xf32>
    %120 = vector.shape_cast %119 : vector<16xf32> to vector<16x1xf32>
    %121 = vector.broadcast %120 : vector<16x1xf32> to vector<16x16xf32>
    %122 = arith.subf %118, %121 : vector<16x16xf32>
    %123 = math.exp %122 : vector<16x16xf32>
    %cst_51 = arith.constant dense<0.000000e+00> : vector<16xf32>
    %124 = vector.multi_reduction <add>, %123, %cst_51 [1] : vector<16x16xf32> to vector<16xf32>
    %125 = vector.shape_cast %124 : vector<16xf32> to vector<16x1xf32>
    %126 = tpu.reciprocal %125 {approx = true} : vector<16x1xf32> -> vector<16x1xf32>
    %127 = vector.broadcast %126 : vector<16x1xf32> to vector<16x16xf32>
    %128 = arith.mulf %123, %127 : vector<16x16xf32>
    %129 = arith.truncf %128 : vector<16x16xf32> to vector<16x16xbf16>
    %cst_52 = arith.constant dense<0.000000e+00> : vector<16x8xf32>
    %130 = tpu.matmul %129, %117, %cst_52 {dimension_numbers = #tpu.dot_dimension_numbers<[1], [0], [0], [1], [0, 0, 1, 1], [], []>} : vector<16x16xbf16>, vector<16x8xbf16>, vector<16x8xf32> -> vector<16x8xf32>
    %131 = arith.truncf %130 : vector<16x8xf32> to vector<16x8xbf16>
    %132 = vector.extract_strided_slice %95 {offsets = [8, 0], sizes = [8, 32], strides = [1, 1]} : vector<32x32xbf16> to vector<8x32xbf16>
    %cst_53 = arith.constant dense<0.000000e+00> : vector<16x32xf32>
    %133 = tpu.matmul %131, %132, %cst_53 {dimension_numbers = #tpu.dot_dimension_numbers<[1], [0], [0], [1], [0, 0, 1, 1], [], []>} : vector<16x8xbf16>, vector<8x32xbf16>, vector<16x32xf32> -> vector<16x32xf32>
    %134 = arith.addf %114, %133 : vector<16x32xf32>
    %135 = vector.extract_strided_slice %89 {offsets = [0, 16], sizes = [16, 8], strides = [1, 1]} : vector<16x32xbf16> to vector<16x8xbf16>
    %136 = vector.extract_strided_slice %91 {offsets = [0, 16], sizes = [16, 8], strides = [1, 1]} : vector<16x32xbf16> to vector<16x8xbf16>
    %137 = vector.extract_strided_slice %93 {offsets = [0, 16], sizes = [16, 8], strides = [1, 1]} : vector<16x32xbf16> to vector<16x8xbf16>
    %cst_54 = arith.constant dense<0.000000e+00> : vector<16x16xf32>
    %138 = tpu.matmul %135, %136, %cst_54 {dimension_numbers = #tpu.dot_dimension_numbers<[1], [1], [0], [0], [0, 0, 1, 0], [], []>} : vector<16x8xbf16>, vector<16x8xbf16>, vector<16x16xf32> -> vector<16x16xf32>
    %cst_55 = arith.constant dense<0xFF800000> : vector<16xf32>
    %139 = vector.multi_reduction <maximumf>, %138, %cst_55 [1] : vector<16x16xf32> to vector<16xf32>
    %140 = vector.shape_cast %139 : vector<16xf32> to vector<16x1xf32>
    %141 = vector.broadcast %140 : vector<16x1xf32> to vector<16x16xf32>
    %142 = arith.subf %138, %141 : vector<16x16xf32>
    %143 = math.exp %142 : vector<16x16xf32>
    %cst_56 = arith.constant dense<0.000000e+00> : vector<16xf32>
    %144 = vector.multi_reduction <add>, %143, %cst_56 [1] : vector<16x16xf32> to vector<16xf32>
    %145 = vector.shape_cast %144 : vector<16xf32> to vector<16x1xf32>
    %146 = tpu.reciprocal %145 {approx = true} : vector<16x1xf32> -> vector<16x1xf32>
    %147 = vector.broadcast %146 : vector<16x1xf32> to vector<16x16xf32>
    %148 = arith.mulf %143, %147 : vector<16x16xf32>
    %149 = arith.truncf %148 : vector<16x16xf32> to vector<16x16xbf16>
    %cst_57 = arith.constant dense<0.000000e+00> : vector<16x8xf32>
    %150 = tpu.matmul %149, %137, %cst_57 {dimension_numbers = #tpu.dot_dimension_numbers<[1], [0], [0], [1], [0, 0, 1, 1], [], []>} : vector<16x16xbf16>, vector<16x8xbf16>, vector<16x8xf32> -> vector<16x8xf32>
    %151 = arith.truncf %150 : vector<16x8xf32> to vector<16x8xbf16>
    %152 = vector.extract_strided_slice %95 {offsets = [16, 0], sizes = [8, 32], strides = [1, 1]} : vector<32x32xbf16> to vector<8x32xbf16>
    %cst_58 = arith.constant dense<0.000000e+00> : vector<16x32xf32>
    %153 = tpu.matmul %151, %152, %cst_58 {dimension_numbers = #tpu.dot_dimension_numbers<[1], [0], [0], [1], [0, 0, 1, 1], [], []>} : vector<16x8xbf16>, vector<8x32xbf16>, vector<16x32xf32> -> vector<16x32xf32>
    %154 = arith.addf %134, %153 : vector<16x32xf32>
    %155 = vector.extract_strided_slice %89 {offsets = [0, 24], sizes = [16, 8], strides = [1, 1]} : vector<16x32xbf16> to vector<16x8xbf16>
    %156 = vector.extract_strided_slice %91 {offsets = [0, 24], sizes = [16, 8], strides = [1, 1]} : vector<16x32xbf16> to vector<16x8xbf16>
    %157 = vector.extract_strided_slice %93 {offsets = [0, 24], sizes = [16, 8], strides = [1, 1]} : vector<16x32xbf16> to vector<16x8xbf16>
    %cst_59 = arith.constant dense<0.000000e+00> : vector<16x16xf32>
    %158 = tpu.matmul %155, %156, %cst_59 {dimension_numbers = #tpu.dot_dimension_numbers<[1], [1], [0], [0], [0, 0, 1, 0], [], []>} : vector<16x8xbf16>, vector<16x8xbf16>, vector<16x16xf32> -> vector<16x16xf32>
    %cst_60 = arith.constant dense<0xFF800000> : vector<16xf32>
    %159 = vector.multi_reduction <maximumf>, %158, %cst_60 [1] : vector<16x16xf32> to vector<16xf32>
    %160 = vector.shape_cast %159 : vector<16xf32> to vector<16x1xf32>
    %161 = vector.broadcast %160 : vector<16x1xf32> to vector<16x16xf32>
    %162 = arith.subf %158, %161 : vector<16x16xf32>
    %163 = math.exp %162 : vector<16x16xf32>
    %cst_61 = arith.constant dense<0.000000e+00> : vector<16xf32>
    %164 = vector.multi_reduction <add>, %163, %cst_61 [1] : vector<16x16xf32> to vector<16xf32>
    %165 = vector.shape_cast %164 : vector<16xf32> to vector<16x1xf32>
    %166 = tpu.reciprocal %165 {approx = true} : vector<16x1xf32> -> vector<16x1xf32>
    %167 = vector.broadcast %166 : vector<16x1xf32> to vector<16x16xf32>
    %168 = arith.mulf %163, %167 : vector<16x16xf32>
    %169 = arith.truncf %168 : vector<16x16xf32> to vector<16x16xbf16>
    %cst_62 = arith.constant dense<0.000000e+00> : vector<16x8xf32>
    %170 = tpu.matmul %169, %157, %cst_62 {dimension_numbers = #tpu.dot_dimension_numbers<[1], [0], [0], [1], [0, 0, 1, 1], [], []>} : vector<16x16xbf16>, vector<16x8xbf16>, vector<16x8xf32> -> vector<16x8xf32>
    %171 = arith.truncf %170 : vector<16x8xf32> to vector<16x8xbf16>
    %172 = vector.extract_strided_slice %95 {offsets = [24, 0], sizes = [8, 32], strides = [1, 1]} : vector<32x32xbf16> to vector<8x32xbf16>
    %cst_63 = arith.constant dense<0.000000e+00> : vector<16x32xf32>
    %173 = tpu.matmul %171, %172, %cst_63 {dimension_numbers = #tpu.dot_dimension_numbers<[1], [0], [0], [1], [0, 0, 1, 1], [], []>} : vector<16x8xbf16>, vector<8x32xbf16>, vector<16x32xf32> -> vector<16x32xf32>
    %174 = arith.addf %154, %173 : vector<16x32xf32>
    %175 = arith.addf %57, %174 : vector<16x32xf32>
    %c0_64 = arith.constant 0 : index
    %c0_65 = arith.constant 0 : index
    %c0_66 = arith.constant 0 : index
    %176 = vector.load %arg13[%c0_64, %c0_65, %c0_66] : memref<2x1x32xf32, #tpu.memory_space<vmem>>, vector<1x1x32xf32>
    %177 = vector.shape_cast %176 : vector<1x1x32xf32> to vector<1x32xf32>
    %178 = vector.broadcast %177 : vector<1x32xf32> to vector<16x32xf32>
    %179 = arith.addf %175, %178 : vector<16x32xf32>
    %c0_67 = arith.constant 0 : index
    %c0_68 = arith.constant 0 : index
    %c0_69 = arith.constant 0 : index
    %180 = vector.load %arg14[%c0_67, %c0_68, %c0_69] : memref<2x1x32xf32, #tpu.memory_space<vmem>>, vector<1x1x32xf32>
    %181 = vector.shape_cast %180 : vector<1x1x32xf32> to vector<1x32xf32>
    %c0_70 = arith.constant 0 : index
    %c0_71 = arith.constant 0 : index
    %c0_72 = arith.constant 0 : index
    %182 = vector.load %arg15[%c0_70, %c0_71, %c0_72] : memref<2x1x32xf32, #tpu.memory_space<vmem>>, vector<1x1x32xf32>
    %183 = vector.shape_cast %182 : vector<1x1x32xf32> to vector<1x32xf32>
    %cst_73 = arith.constant dense<0.000000e+00> : vector<16xf32>
    %184 = vector.multi_reduction <add>, %179, %cst_73 [1] : vector<16x32xf32> to vector<16xf32>
    %185 = vector.shape_cast %184 : vector<16xf32> to vector<16x1xf32>
    %cst_74 = arith.constant 3.200000e+01 : f32
    %186 = vector.broadcast %cst_74 : f32 to vector<16x1xf32>
    %187 = arith.divf %185, %186 : vector<16x1xf32>
    %188 = vector.broadcast %187 : vector<16x1xf32> to vector<16x32xf32>
    %189 = arith.subf %179, %188 : vector<16x32xf32>
    %190 = arith.mulf %189, %189 : vector<16x32xf32>
    %cst_75 = arith.constant dense<0.000000e+00> : vector<16xf32>
    %191 = vector.multi_reduction <add>, %190, %cst_75 [1] : vector<16x32xf32> to vector<16xf32>
    %192 = vector.shape_cast %191 : vector<16xf32> to vector<16x1xf32>
    %cst_76 = arith.constant 3.200000e+01 : f32
    %193 = vector.broadcast %cst_76 : f32 to vector<16x1xf32>
    %194 = arith.divf %192, %193 : vector<16x1xf32>
    %195 = vector.broadcast %187 : vector<16x1xf32> to vector<16x32xf32>
    %196 = arith.subf %179, %195 : vector<16x32xf32>
    %cst_77 = arith.constant 9.99999974E-6 : f32
    %197 = vector.broadcast %cst_77 : f32 to vector<16x1xf32>
    %198 = arith.addf %194, %197 : vector<16x1xf32>
    %199 = math.rsqrt %198 : vector<16x1xf32>
    %200 = vector.broadcast %199 : vector<16x1xf32> to vector<16x32xf32>
    %201 = arith.mulf %196, %200 : vector<16x32xf32>
    %202 = vector.broadcast %181 : vector<1x32xf32> to vector<16x32xf32>
    %203 = arith.mulf %201, %202 : vector<16x32xf32>
    %204 = vector.broadcast %183 : vector<1x32xf32> to vector<16x32xf32>
    %205 = arith.addf %203, %204 : vector<16x32xf32>
    %c0_78 = arith.constant 0 : index
    %c0_79 = arith.constant 0 : index
    %c0_80 = arith.constant 0 : index
    %206 = vector.load %arg16[%c0_78, %c0_79, %c0_80] : memref<2x32x64xbf16, #tpu.memory_space<vmem>>, vector<1x32x64xbf16>
    %207 = vector.shape_cast %206 : vector<1x32x64xbf16> to vector<32x64xbf16>
    %208 = arith.truncf %205 : vector<16x32xf32> to vector<16x32xbf16>
    %cst_81 = arith.constant dense<0.000000e+00> : vector<16x64xf32>
    %209 = tpu.matmul %208, %207, %cst_81 {dimension_numbers = #tpu.dot_dimension_numbers<[1], [0], [0], [1], [0, 0, 1, 1], [], []>} : vector<16x32xbf16>, vector<32x64xbf16>, vector<16x64xf32> -> vector<16x64xf32>
    %c0_82 = arith.constant 0 : index
    %c0_83 = arith.constant 0 : index
    %c0_84 = arith.constant 0 : index
    %210 = vector.load %arg17[%c0_82, %c0_83, %c0_84] : memref<2x1x64xf32, #tpu.memory_space<vmem>>, vector<1x1x64xf32>
    %211 = vector.shape_cast %210 : vector<1x1x64xf32> to vector<1x64xf32>
    %212 = vector.broadcast %211 : vector<1x64xf32> to vector<16x64xf32>
    %213 = arith.addf %209, %212 : vector<16x64xf32>
    %cst_85 = arith.constant 5.000000e-01 : f32
    %214 = vector.broadcast %cst_85 : f32 to vector<16x64xf32>
    %215 = arith.mulf %214, %213 : vector<16x64xf32>
    %cst_86 = arith.constant 4.471500e-02 : f32
    %216 = vector.broadcast %cst_86 : f32 to vector<16x64xf32>
    %217 = arith.mulf %216, %213 : vector<16x64xf32>
    %218 = arith.mulf %217, %213 : vector<16x64xf32>
    %219 = arith.mulf %218, %213 : vector<16x64xf32>
    %220 = arith.addf %213, %219 : vector<16x64xf32>
    %cst_87 = arith.constant 0.797884583 : f32
    %221 = vector.broadcast %cst_87 : f32 to vector<16x64xf32>
    %222 = arith.mulf %221, %220 : vector<16x64xf32>
    %223 = math.tanh %222 : vector<16x64xf32>
    %cst_88 = arith.constant 1.000000e+00 : f32
    %224 = vector.broadcast %cst_88 : f32 to vector<16x64xf32>
    %225 = arith.addf %224, %223 : vector<16x64xf32>
    %226 = arith.mulf %215, %225 : vector<16x64xf32>
    %c0_89 = arith.constant 0 : index
    %c0_90 = arith.constant 0 : index
    %c0_91 = arith.constant 0 : index
    %227 = vector.load %arg18[%c0_89, %c0_90, %c0_91] : memref<2x64x32xbf16, #tpu.memory_space<vmem>>, vector<1x64x32xbf16>
    %228 = vector.shape_cast %227 : vector<1x64x32xbf16> to vector<64x32xbf16>
    %229 = arith.truncf %226 : vector<16x64xf32> to vector<16x64xbf16>
    %cst_92 = arith.constant dense<0.000000e+00> : vector<16x32xf32>
    %230 = tpu.matmul %229, %228, %cst_92 {dimension_numbers = #tpu.dot_dimension_numbers<[1], [0], [0], [1], [0, 0, 1, 1], [], []>} : vector<16x64xbf16>, vector<64x32xbf16>, vector<16x32xf32> -> vector<16x32xf32>
    %231 = arith.addf %179, %230 : vector<16x32xf32>
    %c0_93 = arith.constant 0 : index
    %c0_94 = arith.constant 0 : index
    %c0_95 = arith.constant 0 : index
    %232 = vector.load %arg19[%c0_93, %c0_94, %c0_95] : memref<2x1x32xf32, #tpu.memory_space<vmem>>, vector<1x1x32xf32>
    %233 = vector.shape_cast %232 : vector<1x1x32xf32> to vector<1x32xf32>
    %234 = vector.broadcast %233 : vector<1x32xf32> to vector<16x32xf32>
    %235 = arith.addf %231, %234 : vector<16x32xf32>
    %c1 = arith.constant 1 : index
    %c0_96 = arith.constant 0 : index
    %c0_97 = arith.constant 0 : index
    %236 = vector.load %arg9[%c1, %c0_96, %c0_97] : memref<2x1x32xf32, #tpu.memory_space<vmem>>, vector<1x1x32xf32>
    %237 = vector.shape_cast %236 : vector<1x1x32xf32> to vector<1x32xf32>
    %c1_98 = arith.constant 1 : index
    %c0_99 = arith.constant 0 : index
    %c0_100 = arith.constant 0 : index
    %238 = vector.load %arg10[%c1_98, %c0_99, %c0_100] : memref<2x1x32xf32, #tpu.memory_space<vmem>>, vector<1x1x32xf32>
    %239 = vector.shape_cast %238 : vector<1x1x32xf32> to vector<1x32xf32>
    %cst_101 = arith.constant dense<0.000000e+00> : vector<16xf32>
    %240 = vector.multi_reduction <add>, %235, %cst_101 [1] : vector<16x32xf32> to vector<16xf32>
    %241 = vector.shape_cast %240 : vector<16xf32> to vector<16x1xf32>
    %cst_102 = arith.constant 3.200000e+01 : f32
    %242 = vector.broadcast %cst_102 : f32 to vector<16x1xf32>
    %243 = arith.divf %241, %242 : vector<16x1xf32>
    %244 = vector.broadcast %243 : vector<16x1xf32> to vector<16x32xf32>
    %245 = arith.subf %235, %244 : vector<16x32xf32>
    %246 = arith.mulf %245, %245 : vector<16x32xf32>
    %cst_103 = arith.constant dense<0.000000e+00> : vector<16xf32>
    %247 = vector.multi_reduction <add>, %246, %cst_103 [1] : vector<16x32xf32> to vector<16xf32>
    %248 = vector.shape_cast %247 : vector<16xf32> to vector<16x1xf32>
    %cst_104 = arith.constant 3.200000e+01 : f32
    %249 = vector.broadcast %cst_104 : f32 to vector<16x1xf32>
    %250 = arith.divf %248, %249 : vector<16x1xf32>
    %251 = vector.broadcast %243 : vector<16x1xf32> to vector<16x32xf32>
    %252 = arith.subf %235, %251 : vector<16x32xf32>
    %cst_105 = arith.constant 9.99999974E-6 : f32
    %253 = vector.broadcast %cst_105 : f32 to vector<16x1xf32>
    %254 = arith.addf %250, %253 : vector<16x1xf32>
    %255 = math.rsqrt %254 : vector<16x1xf32>
    %256 = vector.broadcast %255 : vector<16x1xf32> to vector<16x32xf32>
    %257 = arith.mulf %252, %256 : vector<16x32xf32>
    %258 = vector.broadcast %237 : vector<1x32xf32> to vector<16x32xf32>
    %259 = arith.mulf %257, %258 : vector<16x32xf32>
    %260 = vector.broadcast %239 : vector<1x32xf32> to vector<16x32xf32>
    %261 = arith.addf %259, %260 : vector<16x32xf32>
    %c1_106 = arith.constant 1 : index
    %c0_107 = arith.constant 0 : index
    %c0_108 = arith.constant 0 : index
    %262 = vector.load %arg11[%c1_106, %c0_107, %c0_108] : memref<2x32x96xbf16, #tpu.memory_space<vmem>>, vector<1x32x96xbf16>
    %263 = vector.shape_cast %262 : vector<1x32x96xbf16> to vector<32x96xbf16>
    %264 = arith.truncf %261 : vector<16x32xf32> to vector<16x32xbf16>
    %cst_109 = arith.constant dense<0.000000e+00> : vector<16x96xf32>
    %265 = tpu.matmul %264, %263, %cst_109 {dimension_numbers = #tpu.dot_dimension_numbers<[1], [0], [0], [1], [0, 0, 1, 1], [], []>} : vector<16x32xbf16>, vector<32x96xbf16>, vector<16x96xf32> -> vector<16x96xf32>
    %266 = vector.extract_strided_slice %265 {offsets = [0, 0], sizes = [16, 32], strides = [1, 1]} : vector<16x96xf32> to vector<16x32xf32>
    %267 = arith.truncf %266 : vector<16x32xf32> to vector<16x32xbf16>
    %268 = vector.extract_strided_slice %265 {offsets = [0, 32], sizes = [16, 32], strides = [1, 1]} : vector<16x96xf32> to vector<16x32xf32>
    %269 = arith.truncf %268 : vector<16x32xf32> to vector<16x32xbf16>
    %270 = vector.extract_strided_slice %265 {offsets = [0, 64], sizes = [16, 32], strides = [1, 1]} : vector<16x96xf32> to vector<16x32xf32>
    %271 = arith.truncf %270 : vector<16x32xf32> to vector<16x32xbf16>
    %c1_110 = arith.constant 1 : index
    %c0_111 = arith.constant 0 : index
    %c0_112 = arith.constant 0 : index
    %272 = vector.load %arg12[%c1_110, %c0_111, %c0_112] : memref<2x32x32xbf16, #tpu.memory_space<vmem>>, vector<1x32x32xbf16>
    %273 = vector.shape_cast %272 : vector<1x32x32xbf16> to vector<32x32xbf16>
    %274 = vector.extract_strided_slice %267 {offsets = [0, 0], sizes = [16, 8], strides = [1, 1]} : vector<16x32xbf16> to vector<16x8xbf16>
    %275 = vector.extract_strided_slice %269 {offsets = [0, 0], sizes = [16, 8], strides = [1, 1]} : vector<16x32xbf16> to vector<16x8xbf16>
    %276 = vector.extract_strided_slice %271 {offsets = [0, 0], sizes = [16, 8], strides = [1, 1]} : vector<16x32xbf16> to vector<16x8xbf16>
    %cst_113 = arith.constant dense<0.000000e+00> : vector<16x16xf32>
    %277 = tpu.matmul %274, %275, %cst_113 {dimension_numbers = #tpu.dot_dimension_numbers<[1], [1], [0], [0], [0, 0, 1, 0], [], []>} : vector<16x8xbf16>, vector<16x8xbf16>, vector<16x16xf32> -> vector<16x16xf32>
    %cst_114 = arith.constant dense<0xFF800000> : vector<16xf32>
    %278 = vector.multi_reduction <maximumf>, %277, %cst_114 [1] : vector<16x16xf32> to vector<16xf32>
    %279 = vector.shape_cast %278 : vector<16xf32> to vector<16x1xf32>
    %280 = vector.broadcast %279 : vector<16x1xf32> to vector<16x16xf32>
    %281 = arith.subf %277, %280 : vector<16x16xf32>
    %282 = math.exp %281 : vector<16x16xf32>
    %cst_115 = arith.constant dense<0.000000e+00> : vector<16xf32>
    %283 = vector.multi_reduction <add>, %282, %cst_115 [1] : vector<16x16xf32> to vector<16xf32>
    %284 = vector.shape_cast %283 : vector<16xf32> to vector<16x1xf32>
    %285 = tpu.reciprocal %284 {approx = true} : vector<16x1xf32> -> vector<16x1xf32>
    %286 = vector.broadcast %285 : vector<16x1xf32> to vector<16x16xf32>
    %287 = arith.mulf %282, %286 : vector<16x16xf32>
    %288 = arith.truncf %287 : vector<16x16xf32> to vector<16x16xbf16>
    %cst_116 = arith.constant dense<0.000000e+00> : vector<16x8xf32>
    %289 = tpu.matmul %288, %276, %cst_116 {dimension_numbers = #tpu.dot_dimension_numbers<[1], [0], [0], [1], [0, 0, 1, 1], [], []>} : vector<16x16xbf16>, vector<16x8xbf16>, vector<16x8xf32> -> vector<16x8xf32>
    %290 = arith.truncf %289 : vector<16x8xf32> to vector<16x8xbf16>
    %291 = vector.extract_strided_slice %273 {offsets = [0, 0], sizes = [8, 32], strides = [1, 1]} : vector<32x32xbf16> to vector<8x32xbf16>
    %cst_117 = arith.constant dense<0.000000e+00> : vector<16x32xf32>
    %292 = tpu.matmul %290, %291, %cst_117 {dimension_numbers = #tpu.dot_dimension_numbers<[1], [0], [0], [1], [0, 0, 1, 1], [], []>} : vector<16x8xbf16>, vector<8x32xbf16>, vector<16x32xf32> -> vector<16x32xf32>
    %293 = vector.extract_strided_slice %267 {offsets = [0, 8], sizes = [16, 8], strides = [1, 1]} : vector<16x32xbf16> to vector<16x8xbf16>
    %294 = vector.extract_strided_slice %269 {offsets = [0, 8], sizes = [16, 8], strides = [1, 1]} : vector<16x32xbf16> to vector<16x8xbf16>
    %295 = vector.extract_strided_slice %271 {offsets = [0, 8], sizes = [16, 8], strides = [1, 1]} : vector<16x32xbf16> to vector<16x8xbf16>
    %cst_118 = arith.constant dense<0.000000e+00> : vector<16x16xf32>
    %296 = tpu.matmul %293, %294, %cst_118 {dimension_numbers = #tpu.dot_dimension_numbers<[1], [1], [0], [0], [0, 0, 1, 0], [], []>} : vector<16x8xbf16>, vector<16x8xbf16>, vector<16x16xf32> -> vector<16x16xf32>
    %cst_119 = arith.constant dense<0xFF800000> : vector<16xf32>
    %297 = vector.multi_reduction <maximumf>, %296, %cst_119 [1] : vector<16x16xf32> to vector<16xf32>
    %298 = vector.shape_cast %297 : vector<16xf32> to vector<16x1xf32>
    %299 = vector.broadcast %298 : vector<16x1xf32> to vector<16x16xf32>
    %300 = arith.subf %296, %299 : vector<16x16xf32>
    %301 = math.exp %300 : vector<16x16xf32>
    %cst_120 = arith.constant dense<0.000000e+00> : vector<16xf32>
    %302 = vector.multi_reduction <add>, %301, %cst_120 [1] : vector<16x16xf32> to vector<16xf32>
    %303 = vector.shape_cast %302 : vector<16xf32> to vector<16x1xf32>
    %304 = tpu.reciprocal %303 {approx = true} : vector<16x1xf32> -> vector<16x1xf32>
    %305 = vector.broadcast %304 : vector<16x1xf32> to vector<16x16xf32>
    %306 = arith.mulf %301, %305 : vector<16x16xf32>
    %307 = arith.truncf %306 : vector<16x16xf32> to vector<16x16xbf16>
    %cst_121 = arith.constant dense<0.000000e+00> : vector<16x8xf32>
    %308 = tpu.matmul %307, %295, %cst_121 {dimension_numbers = #tpu.dot_dimension_numbers<[1], [0], [0], [1], [0, 0, 1, 1], [], []>} : vector<16x16xbf16>, vector<16x8xbf16>, vector<16x8xf32> -> vector<16x8xf32>
    %309 = arith.truncf %308 : vector<16x8xf32> to vector<16x8xbf16>
    %310 = vector.extract_strided_slice %273 {offsets = [8, 0], sizes = [8, 32], strides = [1, 1]} : vector<32x32xbf16> to vector<8x32xbf16>
    %cst_122 = arith.constant dense<0.000000e+00> : vector<16x32xf32>
    %311 = tpu.matmul %309, %310, %cst_122 {dimension_numbers = #tpu.dot_dimension_numbers<[1], [0], [0], [1], [0, 0, 1, 1], [], []>} : vector<16x8xbf16>, vector<8x32xbf16>, vector<16x32xf32> -> vector<16x32xf32>
    %312 = arith.addf %292, %311 : vector<16x32xf32>
    %313 = vector.extract_strided_slice %267 {offsets = [0, 16], sizes = [16, 8], strides = [1, 1]} : vector<16x32xbf16> to vector<16x8xbf16>
    %314 = vector.extract_strided_slice %269 {offsets = [0, 16], sizes = [16, 8], strides = [1, 1]} : vector<16x32xbf16> to vector<16x8xbf16>
    %315 = vector.extract_strided_slice %271 {offsets = [0, 16], sizes = [16, 8], strides = [1, 1]} : vector<16x32xbf16> to vector<16x8xbf16>
    %cst_123 = arith.constant dense<0.000000e+00> : vector<16x16xf32>
    %316 = tpu.matmul %313, %314, %cst_123 {dimension_numbers = #tpu.dot_dimension_numbers<[1], [1], [0], [0], [0, 0, 1, 0], [], []>} : vector<16x8xbf16>, vector<16x8xbf16>, vector<16x16xf32> -> vector<16x16xf32>
    %cst_124 = arith.constant dense<0xFF800000> : vector<16xf32>
    %317 = vector.multi_reduction <maximumf>, %316, %cst_124 [1] : vector<16x16xf32> to vector<16xf32>
    %318 = vector.shape_cast %317 : vector<16xf32> to vector<16x1xf32>
    %319 = vector.broadcast %318 : vector<16x1xf32> to vector<16x16xf32>
    %320 = arith.subf %316, %319 : vector<16x16xf32>
    %321 = math.exp %320 : vector<16x16xf32>
    %cst_125 = arith.constant dense<0.000000e+00> : vector<16xf32>
    %322 = vector.multi_reduction <add>, %321, %cst_125 [1] : vector<16x16xf32> to vector<16xf32>
    %323 = vector.shape_cast %322 : vector<16xf32> to vector<16x1xf32>
    %324 = tpu.reciprocal %323 {approx = true} : vector<16x1xf32> -> vector<16x1xf32>
    %325 = vector.broadcast %324 : vector<16x1xf32> to vector<16x16xf32>
    %326 = arith.mulf %321, %325 : vector<16x16xf32>
    %327 = arith.truncf %326 : vector<16x16xf32> to vector<16x16xbf16>
    %cst_126 = arith.constant dense<0.000000e+00> : vector<16x8xf32>
    %328 = tpu.matmul %327, %315, %cst_126 {dimension_numbers = #tpu.dot_dimension_numbers<[1], [0], [0], [1], [0, 0, 1, 1], [], []>} : vector<16x16xbf16>, vector<16x8xbf16>, vector<16x8xf32> -> vector<16x8xf32>
    %329 = arith.truncf %328 : vector<16x8xf32> to vector<16x8xbf16>
    %330 = vector.extract_strided_slice %273 {offsets = [16, 0], sizes = [8, 32], strides = [1, 1]} : vector<32x32xbf16> to vector<8x32xbf16>
    %cst_127 = arith.constant dense<0.000000e+00> : vector<16x32xf32>
    %331 = tpu.matmul %329, %330, %cst_127 {dimension_numbers = #tpu.dot_dimension_numbers<[1], [0], [0], [1], [0, 0, 1, 1], [], []>} : vector<16x8xbf16>, vector<8x32xbf16>, vector<16x32xf32> -> vector<16x32xf32>
    %332 = arith.addf %312, %331 : vector<16x32xf32>
    %333 = vector.extract_strided_slice %267 {offsets = [0, 24], sizes = [16, 8], strides = [1, 1]} : vector<16x32xbf16> to vector<16x8xbf16>
    %334 = vector.extract_strided_slice %269 {offsets = [0, 24], sizes = [16, 8], strides = [1, 1]} : vector<16x32xbf16> to vector<16x8xbf16>
    %335 = vector.extract_strided_slice %271 {offsets = [0, 24], sizes = [16, 8], strides = [1, 1]} : vector<16x32xbf16> to vector<16x8xbf16>
    %cst_128 = arith.constant dense<0.000000e+00> : vector<16x16xf32>
    %336 = tpu.matmul %333, %334, %cst_128 {dimension_numbers = #tpu.dot_dimension_numbers<[1], [1], [0], [0], [0, 0, 1, 0], [], []>} : vector<16x8xbf16>, vector<16x8xbf16>, vector<16x16xf32> -> vector<16x16xf32>
    %cst_129 = arith.constant dense<0xFF800000> : vector<16xf32>
    %337 = vector.multi_reduction <maximumf>, %336, %cst_129 [1] : vector<16x16xf32> to vector<16xf32>
    %338 = vector.shape_cast %337 : vector<16xf32> to vector<16x1xf32>
    %339 = vector.broadcast %338 : vector<16x1xf32> to vector<16x16xf32>
    %340 = arith.subf %336, %339 : vector<16x16xf32>
    %341 = math.exp %340 : vector<16x16xf32>
    %cst_130 = arith.constant dense<0.000000e+00> : vector<16xf32>
    %342 = vector.multi_reduction <add>, %341, %cst_130 [1] : vector<16x16xf32> to vector<16xf32>
    %343 = vector.shape_cast %342 : vector<16xf32> to vector<16x1xf32>
    %344 = tpu.reciprocal %343 {approx = true} : vector<16x1xf32> -> vector<16x1xf32>
    %345 = vector.broadcast %344 : vector<16x1xf32> to vector<16x16xf32>
    %346 = arith.mulf %341, %345 : vector<16x16xf32>
    %347 = arith.truncf %346 : vector<16x16xf32> to vector<16x16xbf16>
    %cst_131 = arith.constant dense<0.000000e+00> : vector<16x8xf32>
    %348 = tpu.matmul %347, %335, %cst_131 {dimension_numbers = #tpu.dot_dimension_numbers<[1], [0], [0], [1], [0, 0, 1, 1], [], []>} : vector<16x16xbf16>, vector<16x8xbf16>, vector<16x8xf32> -> vector<16x8xf32>
    %349 = arith.truncf %348 : vector<16x8xf32> to vector<16x8xbf16>
    %350 = vector.extract_strided_slice %273 {offsets = [24, 0], sizes = [8, 32], strides = [1, 1]} : vector<32x32xbf16> to vector<8x32xbf16>
    %cst_132 = arith.constant dense<0.000000e+00> : vector<16x32xf32>
    %351 = tpu.matmul %349, %350, %cst_132 {dimension_numbers = #tpu.dot_dimension_numbers<[1], [0], [0], [1], [0, 0, 1, 1], [], []>} : vector<16x8xbf16>, vector<8x32xbf16>, vector<16x32xf32> -> vector<16x32xf32>
    %352 = arith.addf %332, %351 : vector<16x32xf32>
    %353 = arith.addf %235, %352 : vector<16x32xf32>
    %c1_133 = arith.constant 1 : index
    %c0_134 = arith.constant 0 : index
    %c0_135 = arith.constant 0 : index
    %354 = vector.load %arg13[%c1_133, %c0_134, %c0_135] : memref<2x1x32xf32, #tpu.memory_space<vmem>>, vector<1x1x32xf32>
    %355 = vector.shape_cast %354 : vector<1x1x32xf32> to vector<1x32xf32>
    %356 = vector.broadcast %355 : vector<1x32xf32> to vector<16x32xf32>
    %357 = arith.addf %353, %356 : vector<16x32xf32>
    %c1_136 = arith.constant 1 : index
    %c0_137 = arith.constant 0 : index
    %c0_138 = arith.constant 0 : index
    %358 = vector.load %arg14[%c1_136, %c0_137, %c0_138] : memref<2x1x32xf32, #tpu.memory_space<vmem>>, vector<1x1x32xf32>
    %359 = vector.shape_cast %358 : vector<1x1x32xf32> to vector<1x32xf32>
    %c1_139 = arith.constant 1 : index
    %c0_140 = arith.constant 0 : index
    %c0_141 = arith.constant 0 : index
    %360 = vector.load %arg15[%c1_139, %c0_140, %c0_141] : memref<2x1x32xf32, #tpu.memory_space<vmem>>, vector<1x1x32xf32>
    %361 = vector.shape_cast %360 : vector<1x1x32xf32> to vector<1x32xf32>
    %cst_142 = arith.constant dense<0.000000e+00> : vector<16xf32>
    %362 = vector.multi_reduction <add>, %357, %cst_142 [1] : vector<16x32xf32> to vector<16xf32>
    %363 = vector.shape_cast %362 : vector<16xf32> to vector<16x1xf32>
    %cst_143 = arith.constant 3.200000e+01 : f32
    %364 = vector.broadcast %cst_143 : f32 to vector<16x1xf32>
    %365 = arith.divf %363, %364 : vector<16x1xf32>
    %366 = vector.broadcast %365 : vector<16x1xf32> to vector<16x32xf32>
    %367 = arith.subf %357, %366 : vector<16x32xf32>
    %368 = arith.mulf %367, %367 : vector<16x32xf32>
    %cst_144 = arith.constant dense<0.000000e+00> : vector<16xf32>
    %369 = vector.multi_reduction <add>, %368, %cst_144 [1] : vector<16x32xf32> to vector<16xf32>
    %370 = vector.shape_cast %369 : vector<16xf32> to vector<16x1xf32>
    %cst_145 = arith.constant 3.200000e+01 : f32
    %371 = vector.broadcast %cst_145 : f32 to vector<16x1xf32>
    %372 = arith.divf %370, %371 : vector<16x1xf32>
    %373 = vector.broadcast %365 : vector<16x1xf32> to vector<16x32xf32>
    %374 = arith.subf %357, %373 : vector<16x32xf32>
    %cst_146 = arith.constant 9.99999974E-6 : f32
    %375 = vector.broadcast %cst_146 : f32 to vector<16x1xf32>
    %376 = arith.addf %372, %375 : vector<16x1xf32>
    %377 = math.rsqrt %376 : vector<16x1xf32>
    %378 = vector.broadcast %377 : vector<16x1xf32> to vector<16x32xf32>
    %379 = arith.mulf %374, %378 : vector<16x32xf32>
    %380 = vector.broadcast %359 : vector<1x32xf32> to vector<16x32xf32>
    %381 = arith.mulf %379, %380 : vector<16x32xf32>
    %382 = vector.broadcast %361 : vector<1x32xf32> to vector<16x32xf32>
    %383 = arith.addf %381, %382 : vector<16x32xf32>
    %c1_147 = arith.constant 1 : index
    %c0_148 = arith.constant 0 : index
    %c0_149 = arith.constant 0 : index
    %384 = vector.load %arg16[%c1_147, %c0_148, %c0_149] : memref<2x32x64xbf16, #tpu.memory_space<vmem>>, vector<1x32x64xbf16>
    %385 = vector.shape_cast %384 : vector<1x32x64xbf16> to vector<32x64xbf16>
    %386 = arith.truncf %383 : vector<16x32xf32> to vector<16x32xbf16>
    %cst_150 = arith.constant dense<0.000000e+00> : vector<16x64xf32>
    %387 = tpu.matmul %386, %385, %cst_150 {dimension_numbers = #tpu.dot_dimension_numbers<[1], [0], [0], [1], [0, 0, 1, 1], [], []>} : vector<16x32xbf16>, vector<32x64xbf16>, vector<16x64xf32> -> vector<16x64xf32>
    %c1_151 = arith.constant 1 : index
    %c0_152 = arith.constant 0 : index
    %c0_153 = arith.constant 0 : index
    %388 = vector.load %arg17[%c1_151, %c0_152, %c0_153] : memref<2x1x64xf32, #tpu.memory_space<vmem>>, vector<1x1x64xf32>
    %389 = vector.shape_cast %388 : vector<1x1x64xf32> to vector<1x64xf32>
    %390 = vector.broadcast %389 : vector<1x64xf32> to vector<16x64xf32>
    %391 = arith.addf %387, %390 : vector<16x64xf32>
    %cst_154 = arith.constant 5.000000e-01 : f32
    %392 = vector.broadcast %cst_154 : f32 to vector<16x64xf32>
    %393 = arith.mulf %392, %391 : vector<16x64xf32>
    %cst_155 = arith.constant 4.471500e-02 : f32
    %394 = vector.broadcast %cst_155 : f32 to vector<16x64xf32>
    %395 = arith.mulf %394, %391 : vector<16x64xf32>
    %396 = arith.mulf %395, %391 : vector<16x64xf32>
    %397 = arith.mulf %396, %391 : vector<16x64xf32>
    %398 = arith.addf %391, %397 : vector<16x64xf32>
    %cst_156 = arith.constant 0.797884583 : f32
    %399 = vector.broadcast %cst_156 : f32 to vector<16x64xf32>
    %400 = arith.mulf %399, %398 : vector<16x64xf32>
    %401 = math.tanh %400 : vector<16x64xf32>
    %cst_157 = arith.constant 1.000000e+00 : f32
    %402 = vector.broadcast %cst_157 : f32 to vector<16x64xf32>
    %403 = arith.addf %402, %401 : vector<16x64xf32>
    %404 = arith.mulf %393, %403 : vector<16x64xf32>
    %c1_158 = arith.constant 1 : index
    %c0_159 = arith.constant 0 : index
    %c0_160 = arith.constant 0 : index
    %405 = vector.load %arg18[%c1_158, %c0_159, %c0_160] : memref<2x64x32xbf16, #tpu.memory_space<vmem>>, vector<1x64x32xbf16>
    %406 = vector.shape_cast %405 : vector<1x64x32xbf16> to vector<64x32xbf16>
    %407 = arith.truncf %404 : vector<16x64xf32> to vector<16x64xbf16>
    %cst_161 = arith.constant dense<0.000000e+00> : vector<16x32xf32>
    %408 = tpu.matmul %407, %406, %cst_161 {dimension_numbers = #tpu.dot_dimension_numbers<[1], [0], [0], [1], [0, 0, 1, 1], [], []>} : vector<16x64xbf16>, vector<64x32xbf16>, vector<16x32xf32> -> vector<16x32xf32>
    %409 = arith.addf %357, %408 : vector<16x32xf32>
    %c1_162 = arith.constant 1 : index
    %c0_163 = arith.constant 0 : index
    %c0_164 = arith.constant 0 : index
    %410 = vector.load %arg19[%c1_162, %c0_163, %c0_164] : memref<2x1x32xf32, #tpu.memory_space<vmem>>, vector<1x1x32xf32>
    %411 = vector.shape_cast %410 : vector<1x1x32xf32> to vector<1x32xf32>
    %412 = vector.broadcast %411 : vector<1x32xf32> to vector<16x32xf32>
    %413 = arith.addf %409, %412 : vector<16x32xf32>
    %c0_165 = arith.constant 0 : index
    %c0_166 = arith.constant 0 : index
    %414 = vector.load %arg20[%c0_165, %c0_166] : memref<1x32xf32, #tpu.memory_space<vmem>>, vector<1x32xf32>
    %c0_167 = arith.constant 0 : index
    %c0_168 = arith.constant 0 : index
    %415 = vector.load %arg21[%c0_167, %c0_168] : memref<1x32xf32, #tpu.memory_space<vmem>>, vector<1x32xf32>
    %cst_169 = arith.constant dense<0.000000e+00> : vector<16xf32>
    %416 = vector.multi_reduction <add>, %413, %cst_169 [1] : vector<16x32xf32> to vector<16xf32>
    %417 = vector.shape_cast %416 : vector<16xf32> to vector<16x1xf32>
    %cst_170 = arith.constant 3.200000e+01 : f32
    %418 = vector.broadcast %cst_170 : f32 to vector<16x1xf32>
    %419 = arith.divf %417, %418 : vector<16x1xf32>
    %420 = vector.broadcast %419 : vector<16x1xf32> to vector<16x32xf32>
    %421 = arith.subf %413, %420 : vector<16x32xf32>
    %422 = arith.mulf %421, %421 : vector<16x32xf32>
    %cst_171 = arith.constant dense<0.000000e+00> : vector<16xf32>
    %423 = vector.multi_reduction <add>, %422, %cst_171 [1] : vector<16x32xf32> to vector<16xf32>
    %424 = vector.shape_cast %423 : vector<16xf32> to vector<16x1xf32>
    %cst_172 = arith.constant 3.200000e+01 : f32
    %425 = vector.broadcast %cst_172 : f32 to vector<16x1xf32>
    %426 = arith.divf %424, %425 : vector<16x1xf32>
    %427 = vector.broadcast %419 : vector<16x1xf32> to vector<16x32xf32>
    %428 = arith.subf %413, %427 : vector<16x32xf32>
    %cst_173 = arith.constant 9.99999974E-6 : f32
    %429 = vector.broadcast %cst_173 : f32 to vector<16x1xf32>
    %430 = arith.addf %426, %429 : vector<16x1xf32>
    %431 = math.rsqrt %430 : vector<16x1xf32>
    %432 = vector.broadcast %431 : vector<16x1xf32> to vector<16x32xf32>
    %433 = arith.mulf %428, %432 : vector<16x32xf32>
    %434 = vector.broadcast %414 : vector<1x32xf32> to vector<16x32xf32>
    %435 = arith.mulf %433, %434 : vector<16x32xf32>
    %436 = vector.broadcast %415 : vector<1x32xf32> to vector<16x32xf32>
    %437 = arith.addf %435, %436 : vector<16x32xf32>
    %c0_174 = arith.constant 0 : index
    %c0_175 = arith.constant 0 : index
    %438 = vector.load %arg22[%c0_174, %c0_175] : memref<1x32xf32, #tpu.memory_space<vmem>>, vector<1x32xf32>
    %c0_176 = arith.constant 0 : index
    %c0_177 = arith.constant 0 : index
    %439 = vector.load %arg23[%c0_176, %c0_177] : memref<1x32xf32, #tpu.memory_space<vmem>>, vector<1x32xf32>
    %cst_178 = arith.constant dense<0.000000e+00> : vector<16xf32>
    %440 = vector.multi_reduction <add>, %437, %cst_178 [1] : vector<16x32xf32> to vector<16xf32>
    %441 = vector.shape_cast %440 : vector<16xf32> to vector<16x1xf32>
    %cst_179 = arith.constant 3.200000e+01 : f32
    %442 = vector.broadcast %cst_179 : f32 to vector<16x1xf32>
    %443 = arith.divf %441, %442 : vector<16x1xf32>
    %444 = vector.broadcast %443 : vector<16x1xf32> to vector<16x32xf32>
    %445 = arith.subf %437, %444 : vector<16x32xf32>
    %446 = arith.mulf %445, %445 : vector<16x32xf32>
    %cst_180 = arith.constant dense<0.000000e+00> : vector<16xf32>
    %447 = vector.multi_reduction <add>, %446, %cst_180 [1] : vector<16x32xf32> to vector<16xf32>
    %448 = vector.shape_cast %447 : vector<16xf32> to vector<16x1xf32>
    %cst_181 = arith.constant 3.200000e+01 : f32
    %449 = vector.broadcast %cst_181 : f32 to vector<16x1xf32>
    %450 = arith.divf %448, %449 : vector<16x1xf32>
    %451 = vector.broadcast %443 : vector<16x1xf32> to vector<16x32xf32>
    %452 = arith.subf %437, %451 : vector<16x32xf32>
    %cst_182 = arith.constant 9.99999974E-6 : f32
    %453 = vector.broadcast %cst_182 : f32 to vector<16x1xf32>
    %454 = arith.addf %450, %453 : vector<16x1xf32>
    %455 = math.rsqrt %454 : vector<16x1xf32>
    %456 = vector.broadcast %455 : vector<16x1xf32> to vector<16x32xf32>
    %457 = arith.mulf %452, %456 : vector<16x32xf32>
    %458 = vector.broadcast %438 : vector<1x32xf32> to vector<16x32xf32>
    %459 = arith.mulf %457, %458 : vector<16x32xf32>
    %460 = vector.broadcast %439 : vector<1x32xf32> to vector<16x32xf32>
    %461 = arith.addf %459, %460 : vector<16x32xf32>
    %c0_183 = arith.constant 0 : index
    %c0_184 = arith.constant 0 : index
    %c0_185 = arith.constant 0 : index
    %462 = vector.load %arg24[%c0_183, %c0_184, %c0_185] : memref<1x16x32xf32, #tpu.memory_space<vmem>>, vector<1x16x32xf32>
    %463 = vector.shape_cast %462 : vector<1x16x32xf32> to vector<16x32xf32>
    %464 = vector.shape_cast %461 : vector<16x32xf32> to vector<1x16x32xf32>
    tpu.vector_store %arg24[%c0_183, %c0_184, %c0_185], %464 {strides = array<i32>} : memref<1x16x32xf32, #tpu.memory_space<vmem>>, vector<1x16x32xf32>,
    return
  }
  func.func @transform_0(%arg0: i32) -> (i32, i32, i32) {
    %c0_i32 = arith.constant 0 : i32
    %c0_i32_0 = arith.constant 0 : i32
    %c0_i32_1 = arith.constant 0 : i32
    return %arg0, %c0_i32, %c0_i32_0 : i32, i32, i32
  }
  func.func @transform_1(%arg0: i32) -> (i32, i32) {
    %c0_i32 = arith.constant 0 : i32
    %c0_i32_0 = arith.constant 0 : i32
    %c0_i32_1 = arith.constant 0 : i32
    return %c0_i32, %c0_i32_0 : i32, i32
  }
  func.func @transform_2(%arg0: i32) -> (i32, i32) {
    %c0_i32 = arith.constant 0 : i32
    %c0_i32_0 = arith.constant 0 : i32
    %c0_i32_1 = arith.constant 0 : i32
    return %c0_i32, %c0_i32_0 : i32, i32
  }
  func.func @transform_3(%arg0: i32) -> (i32, i32) {
    %c0_i32 = arith.constant 0 : i32
    %c0_i32_0 = arith.constant 0 : i32
    %c0_i32_1 = arith.constant 0 : i32
    return %c0_i32, %c0_i32_0 : i32, i32
  }
  func.func @transform_4(%arg0: i32) -> (i32, i32) {
    %c0_i32 = arith.constant 0 : i32
    %c0_i32_0 = arith.constant 0 : i32
    %c0_i32_1 = arith.constant 0 : i32
    return %c0_i32, %c0_i32_0 : i32, i32
  }
  func.func @transform_5(%arg0: i32) -> (i32, i32) {
    %c0_i32 = arith.constant 0 : i32
    %c0_i32_0 = arith.constant 0 : i32
    %c0_i32_1 = arith.constant 0 : i32
    return %c0_i32, %c0_i32_0 : i32, i32
  }
  func.func @transform_6(%arg0: i32) -> (i32, i32) {
    %c0_i32 = arith.constant 0 : i32
    %c0_i32_0 = arith.constant 0 : i32
    %c0_i32_1 = arith.constant 0 : i32
    return %c0_i32, %c0_i32_0 : i32, i32
  }
  func.func @transform_7(%arg0: i32) -> (i32, i32) {
    %c0_i32 = arith.constant 0 : i32
    %c0_i32_0 = arith.constant 0 : i32
    %c0_i32_1 = arith.constant 0 : i32
    return %c0_i32, %c0_i32_0 : i32, i32
  }
  func.func @transform_8(%arg0: i32) -> (i32, i32, i32) {
    %c0_i32 = arith.constant 0 : i32
    %c0_i32_0 = arith.constant 0 : i32
    %c0_i32_1 = arith.constant 0 : i32
    %c0_i32_2 = arith.constant 0 : i32
    return %c0_i32, %c0_i32_0, %c0_i32_1 : i32, i32, i32
  }
  func.func @transform_9(%arg0: i32) -> (i32, i32, i32) {
    %c0_i32 = arith.constant 0 : i32
    %c0_i32_0 = arith.constant 0 : i32
    %c0_i32_1 = arith.constant 0 : i32
    %c0_i32_2 = arith.constant 0 : i32
    return %c0_i32, %c0_i32_0, %c0_i32_1 : i32, i32, i32
  }
  func.func @transform_10(%arg0: i32) -> (i32, i32, i32) {
    %c0_i32 = arith.constant 0 : i32
    %c0_i32_0 = arith.constant 0 : i32
    %c0_i32_1 = arith.constant 0 : i32
    %c0_i32_2 = arith.constant 0 : i32
    return %c0_i32, %c0_i32_0, %c0_i32_1 : i32, i32, i32
  }
  func.func @transform_11(%arg0: i32) -> (i32, i32, i32) {
    %c0_i32 = arith.constant 0 : i32
    %c0_i32_0 = arith.constant 0 : i32
    %c0_i32_1 = arith.constant 0 : i32
    %c0_i32_2 = arith.constant 0 : i32
    return %c0_i32, %c0_i32_0, %c0_i32_1 : i32, i32, i32
  }
  func.func @transform_12(%arg0: i32) -> (i32, i32, i32) {
    %c0_i32 = arith.constant 0 : i32
    %c0_i32_0 = arith.constant 0 : i32
    %c0_i32_1 = arith.constant 0 : i32
    %c0_i32_2 = arith.constant 0 : i32
    return %c0_i32, %c0_i32_0, %c0_i32_1 : i32, i32, i32
  }
  func.func @transform_13(%arg0: i32) -> (i32, i32, i32) {
    %c0_i32 = arith.constant 0 : i32
    %c0_i32_0 = arith.constant 0 : i32
    %c0_i32_1 = arith.constant 0 : i32
    %c0_i32_2 = arith.constant 0 : i32
    return %c0_i32, %c0_i32_0, %c0_i32_1 : i32, i32, i32
  }
  func.func @transform_14(%arg0: i32) -> (i32, i32, i32) {
    %c0_i32 = arith.constant 0 : i32
    %c0_i32_0 = arith.constant 0 : i32
    %c0_i32_1 = arith.constant 0 : i32
    %c0_i32_2 = arith.constant 0 : i32
    return %c0_i32, %c0_i32_0, %c0_i32_1 : i32, i32, i32
  }
  func.func @transform_15(%arg0: i32) -> (i32, i32, i32) {
    %c0_i32 = arith.constant 0 : i32
    %c0_i32_0 = arith.constant 0 : i32
    %c0_i32_1 = arith.constant 0 : i32
    %c0_i32_2 = arith.constant 0 : i32
    return %c0_i32, %c0_i32_0, %c0_i32_1 : i32, i32, i32
  }
  func.func @transform_16(%arg0: i32) -> (i32, i32, i32) {
    %c0_i32 = arith.constant 0 : i32
    %c0_i32_0 = arith.constant 0 : i32
    %c0_i32_1 = arith.constant 0 : i32
    %c0_i32_2 = arith.constant 0 : i32
    return %c0_i32, %c0_i32_0, %c0_i32_1 : i32, i32, i32
  }
  func.func @transform_17(%arg0: i32) -> (i32, i32, i32) {
    %c0_i32 = arith.constant 0 : i32
    %c0_i32_0 = arith.constant 0 : i32
    %c0_i32_1 = arith.constant 0 : i32
    %c0_i32_2 = arith.constant 0 : i32
    return %c0_i32, %c0_i32_0, %c0_i32_1 : i32, i32, i32
  }
  func.func @transform_18(%arg0: i32) -> (i32, i32, i32) {
    %c0_i32 = arith.constant 0 : i32
    %c0_i32_0 = arith.constant 0 : i32
    %c0_i32_1 = arith.constant 0 : i32
    %c0_i32_2 = arith.constant 0 : i32
    return %c0_i32, %c0_i32_0, %c0_i32_1 : i32, i32, i32
  }
  func.func @transform_19(%arg0: i32) -> (i32, i32) {
    %c0_i32 = arith.constant 0 : i32
    %c0_i32_0 = arith.constant 0 : i32
    %c0_i32_1 = arith.constant 0 : i32
    return %c0_i32, %c0_i32_0 : i32, i32
  }
  func.func @transform_20(%arg0: i32) -> (i32, i32) {
    %c0_i32 = arith.constant 0 : i32
    %c0_i32_0 = arith.constant 0 : i32
    %c0_i32_1 = arith.constant 0 : i32
    return %c0_i32, %c0_i32_0 : i32, i32
  }
  func.func @transform_21(%arg0: i32) -> (i32, i32) {
    %c0_i32 = arith.constant 0 : i32
    %c0_i32_0 = arith.constant 0 : i32
    %c0_i32_1 = arith.constant 0 : i32
    return %c0_i32, %c0_i32_0 : i32, i32
  }
  func.func @transform_22(%arg0: i32) -> (i32, i32) {
    %c0_i32 = arith.constant 0 : i32
    %c0_i32_0 = arith.constant 0 : i32
    %c0_i32_1 = arith.constant 0 : i32
    return %c0_i32, %c0_i32_0 : i32, i32
  }
  func.func @transform_23(%arg0: i32) -> (i32, i32, i32) {
    %c0_i32 = arith.constant 0 : i32
    %c0_i32_0 = arith.constant 0 : i32
    %c0_i32_1 = arith.constant 0 : i32
    return %arg0, %c0_i32, %c0_i32_0 : i32, i32, i32
  }
}

</mosaic_0001>

<bundles_post_ra>
// kernel: vit_forward.1
= control target key start
LH: loop header
LB: loop body
LE: loop exit
PB: predicated region body
PF: predicated region fallthrough
CT: control target
= control target key end

     0   :  { %s4286_s0 = inlined_call_operand.vmem [shape: f32[2,16,64], index: 0, kind: input, shape index: {}]   ;;  %s4287_s1 = inlined_call_operand.vmem [shape: f32[1,64], index: 1, kind: input, shape index: {}]   ;;  %s4288_s2 = inlined_call_operand.vmem [shape: f32[1,64], index: 2, kind: input, shape index: {}]   ;;  %s4289_s3 = inlined_call_operand.vmem [shape: bf16[64,32], index: 3, kind: input, shape index: {}]   ;;  %s4290_s4 = inlined_call_operand.vmem [shape: f32[1,32], index: 4, kind: input, shape index: {}]   ;;  %s4291_s5 = inlined_call_operand.vmem [shape: f32[1,32], index: 5, kind: input, shape index: {}]   ;;  %s4292_s6 = inlined_call_operand.vmem [shape: f32[1,32], index: 6, kind: input, shape index: {}]   ;;  %s4293_s7 = inlined_call_operand.vmem [shape: f32[16,32], index: 7, kind: input, shape index: {}]   ;;  %s4294_s8 = inlined_call_operand.vmem [shape: f32[2,1,32], index: 8, kind: input, shape index: {}]   ;;  %s4295_s9 = inlined_call_operand.vmem [shape: f32[2,1,32], index: 9, kind: input, shape index: {}]   ;;  %s4296_s10 = inlined_call_operand.vmem [shape: bf16[2,32,96], index: 10, kind: input, shape index: {}]   ;;  %s4297_s11 = inlined_call_operand.vmem [shape: bf16[2,32,32], index: 11, kind: input, shape index: {}]   ;;  %s4298_s12 = inlined_call_operand.vmem [shape: f32[2,1,32], index: 12, kind: input, shape index: {}]   ;;  %s4299_s13 = inlined_call_operand.vmem [shape: f32[2,1,32], index: 13, kind: input, shape index: {}]   ;;  %s4300_s14 = inlined_call_operand.vmem [shape: f32[2,1,32], index: 14, kind: input, shape index: {}]   ;;  %s4301_s15 = inlined_call_operand.vmem [shape: bf16[2,32,64], index: 15, kind: input, shape index: {}]   ;;  %s4302_s16 = inlined_call_operand.vmem [shape: f32[2,1,64], index: 16, kind: input, shape index: {}]   ;;  %s4303_s17 = inlined_call_operand.vmem [shape: bf16[2,64,32], index: 17, kind: input, shape index: {}]   ;;  %s4304_s18 = inlined_call_operand.vmem [shape: f32[2,1,32], index: 18, kind: input, shape index: {}]   ;;  %s4305_s19 = inlined_call_operand.vmem [shape: f32[1,32], index: 19, kind: input, shape index: {}]   ;;  %s4306_s20 = inlined_call_operand.vmem [shape: f32[1,32], index: 20, kind: input, shape index: {}]   ;;  %s4307_s21 = inlined_call_operand.vmem [shape: f32[1,32], index: 21, kind: input, shape index: {}]   ;;  %s4308_s22 = inlined_call_operand.vmem [shape: f32[1,32], index: 22, kind: input, shape index: {}]   ;;  %s4309_s23 = inlined_call_operand.vmem [shape: f32[2,16,32], index: 23, kind: output, shape index: {}]  }
   0x1   :  { %4321 = sst [smem:[#allocation2_spill]] %s4286_s0 }
   0x2   :  { %4322 = sst [smem:[#allocation3_spill]] %s4287_s1 }
   0x3   :  { %4323 = sst [smem:[#allocation4_spill]] %s4288_s2 }
   0x4   :  { %4324 = sst [smem:[#allocation5_spill]] %s4289_s3 }
   0x5   :  { %4325 = sst [smem:[#allocation6_spill]] %s4290_s4  ;;  %s3776_s4 = smov 0  }
   0x6   :  { %4326 = sst [smem:[#allocation7_spill]] %s4291_s5 }
   0x7   :  { %4327 = sst [smem:[#allocation8_spill]] %s4292_s6 }
   0x8   :  { %4328 = sst [smem:[#allocation9_spill]] %s4293_s7 }
   0x9 LB: > { %s3089_s30 = sadd.s32 4294967295, %s3641_s4   ;;  %p3093_p0 = scmp.ge.s32.totalorder %s3641_s4, 1  ;;  %s3641_s4 = sphi %s3776_s4, %s33_s4  }
   0xa   : > { %p637_p1 = scmp.lt.s32.totalorder %s3641_s4, 3 }
   0xc   : > { %p638_p2 = pnand %p3093_p0, %p637_p1 }
   0xd   : > { %p701_p3 = scmp.lt.s32.totalorder (!%p638_p2), %s3089_s30, 1  ;;  %s4329_s1 = sld [smem:[#allocation2_spill]] (!%p638_p2) }
   0xe   : > { %641 = sbr.rel (%p638_p2) target bundleno = 9034 (0x234a), region = 112  ;;  %s4330_s27 = sld [smem:[#allocation5_spill]] (!%p638_p2) }
   0xf   : > { %s4332_s7 = sld [smem:[#allocation4_spill]] (!%p638_p2)  ;;  %s3645_s29 = smov (!%p638_p2), 96  }
  0x10   : > { %s4333_s3 = sld [smem:[#allocation6_spill]] (!%p638_p2)  ;;  %s3647_s0 = smov (!%p638_p2), 120  }
  0x11   : > { %s4334_s5 = sld [smem:[#allocation7_spill]] (!%p638_p2)  ;;  %s4318_s25 = smov (!%p638_p2), 64  }
  0x12   : > { %s4335_s2 = sld [smem:[#allocation8_spill]] (!%p638_p2)  ;;  %s4313_s6 = smov (!%p638_p2), 48  }
  0x13   : > { %s4347_s30 = smov (!%p701_p3, %s3089_s30), 1  ;;  %vm716_vm0 = vcmask 523264   ;;  %v3643_v15 = vmov 0.0   ;;  %vm3644_vm1 = vmmov 0   ;;  %vm846_vm2 = vcmask 261120   ;;  %s4336_s28 = sld [smem:[#allocation9_spill]] }
  0x14   : > { %s4312_s24 = sshll.u32 %s4347_s30, 4  ;;  %v3511_v14 = vld [vmem:[%s4330_s27 + $0x18] sm:$0xff]   ;;  %3278 = vmatprep.subr.bf16.mxu0 %v3643_v15  ;;  %3286 = vmatprep.mubr.msk.bf16.mxu0 %vm3644_vm1, %v3643_v15  ;;  %v3512_v16 = vld [vmem:[%s4330_s27 + $0x10] sm:$0xff]   ;;  %v3513_v17 = vld [vmem:[%s4330_s27 + $0x8] sm:$0xff]   ;;  %vm1007_vm3 = vcmask 64512   ;;  %vm1055_vm4 = vcmask 130048  }
  0x15   : > { %s705_s26 = scalar_lea.vmem %s4329_s1, %s4312_s24  ;;  %3279 = vmatpush3.bf16.msra.mxu0 %v3511_v14  ;;  %3290 = vmatprep.subr.bf16.mxu1 %v3643_v15  ;;  %v3514_v18 = vld [vmem:[%s4330_s27] sm:$0xff]   ;;  %s4319_s1 = smov 112   ;;  %vm1252_vm5 = vcmask 1043456  }
  0x16   : > { %v712_v0 = vld [vmem:[%s705_s26] sm:$0xff]  ;;  %v713_v1 = vld [vmem:[%s705_s26 + $0x8] sm:$0xff]  ;;  %3280 = vmatprep.subr.bf16.mxu0 %v3643_v15  ;;  %3294 = vmatprep.mubr.msk.bf16.mxu1 %vm3644_vm1, %v3643_v15  ;;  %s4331_s26 = sld [smem:[#allocation3_spill]]  ;;  %s4314_s24 = smov 40  }
  0x17   : > { %v717_v2 = vsel %vm716_vm0, %v712_v0, 0.0  ;;  %v720_v3 = vsel %vm716_vm0, %v713_v1, 0.0  ;;  %v3099_v31 = vld [vmem:[%s4332_s7] ss:$0 sm:$0xff]  ;;  %s4315_s7 = smov 104  }
  0x18   : > { %718 = vadd.xlane.f32.xlu0 %v717_v2  ;;  %v3100_v36 = vld [vmem:[%s4333_s3] ss:$0 sm:$0xff]  ;;  %s3646_s3 = smov 88  }
  0x19   : > { %3281 = vmatpush3.bf16.msra.mxu0 %v3512_v16  ;;  %v3106_v62 = vld [vmem:[%s4334_s5] ss:$0 sm:$0xff]  ;;  %s4317_s5 = smov 80  }
  0x1a   : > { %3282 = vmatprep.subr.bf16.mxu0 %v3643_v15 }
  0x1c   : > { %721 = vadd.xlane.f32.xlu0 %v720_v3  ;;  %v3098_v27 = vld [vmem:[%s4331_s26] ss:$0 sm:$0xff]  ;;  %s4320_s26 = smov 56  }
  0x1d   : > { %3283 = vmatpush3.bf16.msra.mxu0 %v3513_v17  ;;  %v890_v3 = vld [vmem:[%s4336_s28] sm:$0xff] }
  0x1e   : > { %3284 = vmatprep.subr.bf16.mxu0 %v3643_v15 }
  0x21   : > { %3285 = vmatpush3.bf16.msra.mxu0 %v3514_v18 }
  0x22   : > { %3316 = vmatprep.subr.bf16.mxu0 %v3643_v15 }
  0xa1   : > { %v719_v4 = vpop.xlane.xlu0 %718 }
  0xa2   : > { %v724_v5 = vmul.f32 0.015625, %v719_v4 }
  0xa4   : > { %v726_v6 = vsub.f32 %v712_v0, %v724_v5  ;;  %v3107_v0 = vld [vmem:[%s4335_s2] ss:$0 sm:$0xff]  ;;  %s4316_s2 = smov 72  }
  0xa5   : > { %v722_v7 = vpop.xlane.xlu0 %721 }
  0xa6   : > { %v725_v8 = vmul.f32 0.015625, %v722_v7  ;;  %v728_v9 = vmul.f32 %v726_v6, %v726_v6 }
  0xa8   : > { %v727_v10 = vsub.f32 %v713_v1, %v725_v8  ;;  %v730_v11 = vsel %vm716_vm0, %v728_v9, 0.0  ;;  %v891_v8 = vld [vmem:[%s4336_s28 + $0x8] sm:$0xff] }
  0xa9   : > { %731 = vadd.xlane.f32.xlu1 %v730_v11 }
  0xaa   : > { %v729_v12 = vmul.f32 %v727_v10, %v727_v10 }
  0xac   : > { %v733_v13 = vsel %vm716_vm0, %v729_v12, 0.0 }
  0xad   : > { %734 = vadd.xlane.f32.xlu1 %v733_v13 }
 0x132   : > { %v732_v19 = vpop.xlane.xlu1 %731 }
 0x133   : > { %v736_v20 = vmul.f32 0.015625, %v732_v19 }
 0x135   : > { %v738_v21 = vadd.f32 1e-05, %v736_v20 }
 0x136   : > { %v735_v22 = vpop.xlane.xlu1 %734 }
 0x137   : > { %3531 = vrsqrt.f32 %v738_v21  ;;  %v737_v23 = vmul.f32 0.015625, %v735_v22 }
 0x139   : > { %v739_v24 = vadd.f32 1e-05, %v737_v23 }
 0x13b   : > { %3533 = vrsqrt.f32 %v739_v24  ;;  %v3515_v24 = vld [vmem:[%s4296_s10 + $0x8] sm:$0xff]  }
 0x13c   : > { %3291 = vmatpush3.bf16.msra.mxu1 %v3515_v24 }
 0x13d   : > { %3292 = vmatprep.subr.bf16.mxu1 %v3643_v15 }
 0x144   : > { %v3532_v25 = vpop.eup %3531 }
 0x145   : > { %v742_v26 = vmul.f32 %v3532_v25, %v726_v6  ;;  %v3516_v25 = vld [vmem:[%s4296_s10] sm:$0xff]  }
 0x146   : > { %3293 = vmatpush3.bf16.msra.mxu1 %v3516_v25 }
 0x147   : > { %v750_v30 = vmul.f32 %v3098_v27, %v742_v26  ;;  %3298 = vmatprep.subr.bf16.mxu1 %v3643_v15 }
 0x148   : > { %v3534_v28 = vpop.eup %3533 }
 0x149   : > { %v743_v29 = vmul.f32 %v3534_v28, %v727_v10  ;;  %v758_v33 = vadd.f32 %v3099_v31, %v750_v30 }
 0x14b   : > { %v751_v32 = vmul.f32 %v3098_v27, %v743_v29 }
 0x14d   : > { %v759_v34 = vadd.f32 %v3099_v31, %v751_v32 }
 0x14f   : > { %v768_v35 = vpack.c.bf16 %v759_v34, %v758_v33  ;;  %v3108_v34 = vld [vmem:[%s4294_s8] ss:$0 sm:$0xff] }
 0x151   : > { %3287 = vmatmul.mubr.msk.bf16.vlgmr.msra.gmra.mxu0 %vm716_vm0, %v768_v35 }
 0x152   : > { %3318 = vmatprep.mubr.msk.bf16.mxu0 %vm3644_vm1, %v3643_v15 }
 0x211   : > { %v837_v37 = vpop.f32.mrf.mxu0 }
 0x212   : > { %v838_v38 = vadd.f32 %v3100_v36, %v837_v37 }
 0x213   : > { %v3288_v39 = vpop.f32.mrf.mxu0 }
 0x214   : > { %v847_v40 = vsel %vm846_vm2, %v838_v38, 0.0 }
 0x215   : > { %848 = vadd.xlane.f32.xlu0 %v847_v40  ;;  %v840_v41 = vpop.f32.mrf.mxu0 }
 0x216   : > { %v841_v42 = vadd.f32 %v3100_v36, %v840_v41 }
 0x217   : > { %v3289_v43 = vpop.f32.mrf.mxu0 }
 0x218   : > { %v850_v44 = vsel %vm846_vm2, %v841_v42, 0.0 }
 0x219   : > { %851 = vadd.xlane.f32.xlu1 %v850_v44 }
 0x29e   : > { %v849_v45 = vpop.xlane.xlu0 %848 }
 0x29f   : > { %v854_v46 = vmul.f32 0.03125, %v849_v45 }
 0x2a1   : > { %v856_v47 = vsub.f32 %v838_v38, %v854_v46  ;;  %v3109_v38 = vld [vmem:[%s4295_s9] ss:$0 sm:$0xff] }
 0x2a2   : > { %v852_v48 = vpop.xlane.xlu1 %851 }
 0x2a3   : > { %v855_v49 = vmul.f32 0.03125, %v852_v48  ;;  %v858_v50 = vmul.f32 %v856_v47, %v856_v47 }
 0x2a5   : > { %v857_v51 = vsub.f32 %v841_v42, %v855_v49  ;;  %v860_v52 = vsel %vm846_vm2, %v858_v50, 0.0 }
 0x2a6   : > { %861 = vadd.xlane.f32.xlu0 %v860_v52 }
 0x2a7   : > { %v859_v53 = vmul.f32 %v857_v51, %v857_v51 }
 0x2a9   : > { %v863_v54 = vsel %vm846_vm2, %v859_v53, 0.0 }
 0x2aa   : > { %864 = vadd.xlane.f32.xlu1 %v863_v54 }
 0x32f   : > { %v862_v55 = vpop.xlane.xlu0 %861 }
 0x330   : > { %v866_v56 = vmul.f32 0.03125, %v862_v55 }
 0x332   : > { %v868_v57 = vadd.f32 1e-05, %v866_v56 }
 0x333   : > { %v865_v58 = vpop.xlane.xlu1 %864 }
 0x334   : > { %3535 = vrsqrt.f32 %v868_v57  ;;  %v867_v59 = vmul.f32 0.03125, %v865_v58 }
 0x336   : > { %v869_v60 = vadd.f32 1e-05, %v867_v59 }
 0x338   : > { %3537 = vrsqrt.f32 %v869_v60 }
 0x341   : > { %v3536_v61 = vpop.eup %3535 }
 0x342   : > { %v872_v63 = vmul.f32 %v3536_v61, %v856_v47 }
 0x344   : > { %v880_v1 = vmul.f32 %v3106_v62, %v872_v63 }
 0x345   : > { %v3538_v2 = vpop.eup %3537 }
 0x346   : > { %v888_v4 = vadd.f32 %v3107_v0, %v880_v1  ;;  %v873_v5 = vmul.f32 %v3538_v2, %v857_v51 }
 0x348   : > { %v3843_v6 = vadd.f32 %v890_v3, %v888_v4  ;;  %v881_v7 = vmul.f32 %v3106_v62, %v873_v5 }
 0x34a   : > { %v896_v9 = vsel %vm846_vm2, %v3843_v6, 0.0  ;;  %v889_v10 = vadd.f32 %v3107_v0, %v881_v7 }
 0x34b   : > { %897 = vadd.xlane.f32.xlu0 %v896_v9 }
 0x34c   : > { %v3850_v11 = vadd.f32 %v891_v8, %v889_v10 }
 0x34e   : > { %v899_v12 = vsel %vm846_vm2, %v3850_v11, 0.0 }
 0x34f   : > { %900 = vadd.xlane.f32.xlu1 %v899_v12 }
 0x3d4   : > { %v898_v13 = vpop.xlane.xlu0 %897 }
 0x3d5   : > { %v902_v14 = vmul.f32 0.03125, %v898_v13 }
 0x3d7   : > { %v904_v16 = vsub.f32 %v3843_v6, %v902_v14 }
 0x3d8   : > { %v901_v17 = vpop.xlane.xlu1 %900 }
 0x3d9   : > { %v903_v18 = vmul.f32 0.03125, %v901_v17  ;;  %v906_v19 = vmul.f32 %v904_v16, %v904_v16 }
 0x3db   : > { %v905_v20 = vsub.f32 %v3850_v11, %v903_v18  ;;  %v908_v21 = vsel %vm846_vm2, %v906_v19, 0.0 }
 0x3dc   : > { %909 = vadd.xlane.f32.xlu0 %v908_v21 }
 0x3dd   : > { %v907_v22 = vmul.f32 %v905_v20, %v905_v20 }
 0x3df   : > { %v911_v23 = vsel %vm846_vm2, %v907_v22, 0.0 }
 0x3e0   : > { %912 = vadd.xlane.f32.xlu1 %v911_v23 }
 0x465   : > { %v910_v26 = vpop.xlane.xlu0 %909 }
 0x466   : > { %v914_v27 = vmul.f32 0.03125, %v910_v26 }
 0x468   : > { %v916_v28 = vadd.f32 1e-05, %v914_v27 }
 0x469   : > { %v913_v29 = vpop.xlane.xlu1 %912 }
 0x46a   : > { %3539 = vrsqrt.f32 %v916_v28  ;;  %v915_v30 = vmul.f32 0.03125, %v913_v29 }
 0x46c   : > { %v917_v31 = vadd.f32 1e-05, %v915_v30 }
 0x46e   : > { %3541 = vrsqrt.f32 %v917_v31 }
 0x477   : > { %v3540_v32 = vpop.eup %3539 }
 0x478   : > { %v920_v33 = vmul.f32 %v3540_v32, %v904_v16 }
 0x47a   : > { %v928_v37 = vmul.f32 %v3108_v34, %v920_v33 }
 0x47b   : > { %v3542_v35 = vpop.eup %3541 }
 0x47c   : > { %v921_v36 = vmul.f32 %v3542_v35, %v905_v20  ;;  %v936_v40 = vadd.f32 %v3109_v38, %v928_v37 }
 0x47e   : > { %v929_v39 = vmul.f32 %v3108_v34, %v921_v36 }
 0x480   : > { %v937_v41 = vadd.f32 %v3109_v38, %v929_v39 }
 0x482   : > { %v942_v42 = vpack.c.bf16 %v937_v41, %v936_v40 }
 0x484   : > { %3295 = vmatmul.mubr.msk.bf16.vlgmr.msra.gmra.mxu1 %vm846_vm2, %v942_v42  ;;  %v1000_v42 = vld [vmem:[%s4297_s11] sm:$0xf] }
 0x485   : > { %3300 = vmatprep.mubr.msk.bf16.mxu1 %vm3644_vm1, %v3643_v15 }
 0x544   : > { %v992_v43 = vpop.f32.mrf.mxu1 }
 0x546   : > { %v3296_v44 = vpop.f32.mrf.mxu1 }
 0x548   : > { %v995_v45 = vpop.f32.mrf.mxu1 }
 0x549   : > { %v3875_v46 = vpack.c.bf16 %v995_v45, %v992_v43 }
 0x54a   : > { %v3297_v47 = vpop.f32.mrf.mxu1 }
 0x54b   : > { %1005 = vrot.lane.b32.xlu0 %v3875_v46, %s3645_s29  ;;  %v1301_v47 = vsel %vm1252_vm5, %v1000_v42, 0 }
 0x54f   : > { %1129 = vrot.lane.b32.xlu0 %v3875_v46, %s3646_s3 }
 0x553   : > { %1127 = vrot.lane.b32.xlu0 %v3875_v46, %s3647_s0 }
 0x5bd   : > { %v1006_v48 = vpop.permute.xlu0 %1005 }
 0x5be   : > { %v1012_v49 = vsel %vm1007_vm3, %v1006_v48, 0  ;;  %v1001_v48 = vld [vmem:[%s4297_s11 + $0x4] sm:$0xf] }
 0x5bf   : > { %3299 = vmatpush3.bf16.xpose.msra.mxu1 %v1012_v49  ;;  %v1254_v49 = vsel %vm1252_vm5, %v1001_v48, 0 }
 0x5c0   : > { %3304 = vmatprep.subr.bf16.mxu1 %v3643_v15 }
 0x5c1   : > { %v1130_v10 = vpop.permute.xlu0 %1129 }
 0x5c2   : > { %v1135_v13 = vsel %vm1007_vm3, %v1130_v10, 0 }
 0x5c5   : > { %v1128_v14 = vpop.permute.xlu0 %1127 }
 0x5c6   : > { %3301 = vmatmul.mubr.msk.bf16.vlgmr.msra.gmra.mxu1 %vm1007_vm3, %v3875_v46 }
 0x5c7   : > { %3306 = vmatprep.mubr.msk.bf16.mxu1 %vm3644_vm1, %v3643_v15 }
 0x686   : > { %v1048_v50 = vpop.f32.mrf.mxu1 }
 0x687   : > { %v1056_v51 = vsel %vm1055_vm4, %v1048_v50, -inf }
 0x688   : > { %1057 = vmax.xlane.f32.xlu1 %v1056_v51  ;;  %v3302_v52 = vpop.f32.mrf.mxu1 }
 0x68a   : > { %v1051_v53 = vpop.f32.mrf.mxu1 }
 0x68b   : > { %v1059_v54 = vsel %vm1055_vm4, %v1051_v53, -inf }
 0x68c   : > { %1060 = vmax.xlane.f32.xlu1 %v1059_v54  ;;  %v3303_v55 = vpop.f32.mrf.mxu1 }
 0x711   : > { %v1058_v56 = vpop.xlane.xlu1 %1057 }
 0x712   : > { %v1062_v57 = vsub.f32 %v1048_v50, %v1058_v56 }
 0x714   : > { %v1064_v58 = vmul.f32 1.442695, %v1062_v57 }
 0x715   : > { %v1061_v59 = vpop.xlane.xlu1 %1060 }
 0x716   : > { %3543 = vpow2.f32 %v1064_v58  ;;  %v1063_v60 = vsub.f32 %v1051_v53, %v1061_v59 }
 0x718   : > { %v1066_v61 = vmul.f32 1.442695, %v1063_v60 }
 0x71a   : > { %3545 = vpow2.f32 %v1066_v61 }
 0x723   : > { %v3544_v62 = vpop.eup %3543 }
 0x724   : > { %v1068_v63 = vsel %vm1055_vm4, %v3544_v62, 0.0 }
 0x725   : > { %1069 = vadd.xlane.f32.xlu1 %v1068_v63 }
 0x727   : > { %v3546_v0 = vpop.eup %3545 }
 0x728   : > { %v1071_v1 = vsel %vm1055_vm4, %v3546_v0, 0.0 }
 0x729   : > { %1072 = vadd.xlane.f32.xlu1 %v1071_v1 }
 0x73a   : > { %1079 = vrot.lane.b32.xlu1 %v3875_v46, %s4318_s25 }
 0x7ae   : > { %v1070_v2 = vpop.xlane.xlu1 %1069 }
 0x7af   : > { %3547 = vrcp.f32 %v1070_v2 }
 0x7b2   : > { %v1073_v3 = vpop.xlane.xlu1 %1072 }
 0x7b3   : > { %3549 = vrcp.f32 %v1073_v3 }
 0x7b6   : > { %v1080_v4 = vpop.permute.xlu1 %1079 }
 0x7b7   : > { %3305 = vmatpush3.bf16.msra.mxu1 %v1080_v4 }
 0x7b8   : > { %3310 = vmatprep.subr.bf16.mxu1 %v3643_v15 }
 0x7bc   : > { %v3548_v5 = vpop.eup %3547 }
 0x7bd   : > { %v1076_v8 = vmul.f32 %v3548_v5, %v3544_v62 }
 0x7c0   : > { %v3550_v7 = vpop.eup %3549 }
 0x7c1   : > { %v1077_v9 = vmul.f32 %v3550_v7, %v3546_v0 }
 0x7c3   : > { %v1078_v12 = vpack.c.bf16 %v1077_v9, %v1076_v8 }
 0x7c5   : > { %3307 = vmatmul.mubr.msk.bf16.vlgmr.msra.gmra.mxu1 %vm1055_vm4, %v1078_v12 }
 0x7c6   : > { %3311 = vmatpush3.bf16.xpose.msra.mxu1 %v1135_v13  ;;  %3312 = vmatprep.mubr.msk.bf16.mxu1 %vm3644_vm1, %v3643_v15 }
 0x7c7   : > { %3322 = vmatprep.subr.bf16.mxu1 %v3643_v15 }
 0x7cd   : > { %3313 = vmatmul.mubr.msk.bf16.vlgmr.msra.gmra.mxu1 %vm1007_vm3, %v1128_v14 }
 0x7ce   : > { %3324 = vmatprep.mubr.msk.bf16.mxu1 %vm3644_vm1, %v3643_v15  ;;  %3323 = vmatpush3.bf16.msra.mxu1 %v1254_v49 }
 0x7cf   : > { %3334 = vmatprep.subr.bf16.mxu1 %v3643_v15 }
 0x885   : > { %v1119_v16 = vpop.f32.mrf.mxu1 }
 0x887   : > { %v3308_v17 = vpop.f32.mrf.mxu1 }
 0x889   : > { %v1122_v18 = vpop.f32.mrf.mxu1 }
 0x88a   : > { %v1126_v19 = vpack.c.bf16 %v1122_v18, %v1119_v16 }
 0x88b   : > { %v3309_v20 = vpop.f32.mrf.mxu1 }
 0x88d   : > { %v1171_v21 = vpop.f32.mrf.mxu1 }
 0x88e   : > { %v1178_v22 = vsel %vm1055_vm4, %v1171_v21, -inf }
 0x88f   : > { %1179 = vmax.xlane.f32.xlu0 %v1178_v22  ;;  %v3314_v23 = vpop.f32.mrf.mxu1 }
 0x891   : > { %v1174_v24 = vpop.f32.mrf.mxu1 }
 0x892   : > { %v1181_v25 = vsel %vm1055_vm4, %v1174_v24, -inf }
 0x893   : > { %1182 = vmax.xlane.f32.xlu1 %v1181_v25  ;;  %v3315_v26 = vpop.f32.mrf.mxu1 }
 0x8a4   : > { %1346 = vrot.lane.b32.xlu1 %v3875_v46, %s4317_s5  ;;  %s4341_s5 = smov 72  }
 0x8a8   : > { %1344 = vrot.lane.b32.xlu1 %v3875_v46, %s4319_s1  ;;  %s4342_s1 = smov 104  }
 0x918   : > { %v1180_v27 = vpop.xlane.xlu0 %1179 }
 0x919   : > { %v1184_v28 = vsub.f32 %v1171_v21, %v1180_v27 }
 0x91b   : > { %v1186_v29 = vmul.f32 1.442695, %v1184_v28 }
 0x91c   : > { %v1183_v30 = vpop.xlane.xlu1 %1182 }
 0x91d   : > { %3551 = vpow2.f32 %v1186_v29  ;;  %v1185_v31 = vsub.f32 %v1174_v24, %v1183_v30 }
 0x91f   : > { %v1188_v32 = vmul.f32 1.442695, %v1185_v31 }
 0x920   : > { %v1347_v52 = vpop.permute.xlu1 %1346 }
 0x921   : > { %3553 = vpow2.f32 %v1188_v32  ;;  %v1352_v56 = vsel %vm1007_vm3, %v1347_v52, 0  ;;  %v1002_v32 = vld [vmem:[%s4297_s11 + $0x8] sm:$0xf] }
 0x924   : > { %v1345_v60 = vpop.permute.xlu1 %1344 }
 0x92a   : > { %v3552_v33 = vpop.eup %3551 }
 0x92b   : > { %v1190_v34 = vsel %vm1055_vm4, %v3552_v33, 0.0 }
 0x92c   : > { %1191 = vadd.xlane.f32.xlu0 %v1190_v34 }
 0x92e   : > { %v3554_v35 = vpop.eup %3553 }
 0x92f   : > { %v1193_v36 = vsel %vm1055_vm4, %v3554_v35, 0.0 }
 0x930   : > { %1194 = vadd.xlane.f32.xlu0 %v1193_v36 }
 0x946   : > { %1201 = vrot.lane.b32.xlu0 %v3875_v46, %s4320_s26  ;;  %s4343_s26 = smov 48  }
 0x9b5   : > { %v1192_v37 = vpop.xlane.xlu0 %1191 }
 0x9b6   : > { %3555 = vrcp.f32 %v1192_v37 }
 0x9b9   : > { %v1195_v38 = vpop.xlane.xlu0 %1194 }
 0x9ba   : > { %3557 = vrcp.f32 %v1195_v38 }
 0x9bd   : > { %v1202_v39 = vpop.permute.xlu0 %1201 }
 0x9be   : > { %3317 = vmatpush3.bf16.msra.mxu0 %v1202_v39 }
 0x9bf   : > { %3328 = vmatprep.subr.bf16.mxu0 %v3643_v15 }
 0x9c3   : > { %v3556_v40 = vpop.eup %3555 }
 0x9c4   : > { %v1198_v43 = vmul.f32 %v3556_v40, %v3552_v33  ;;  %v1470_v33 = vsel %vm1252_vm5, %v1002_v32, 0 }
 0x9c7   : > { %v3558_v41 = vpop.eup %3557 }
 0x9c8   : > { %v1199_v44 = vmul.f32 %v3558_v41, %v3554_v35 }
 0x9ca   : > { %v1200_v45 = vpack.c.bf16 %v1199_v44, %v1198_v43 }
 0x9cc   : > { %3319 = vmatmul.mubr.msk.bf16.vlgmr.msra.gmra.mxu0 %vm1055_vm4, %v1200_v45 }
 0x9cd   : > { %3329 = vmatpush3.bf16.msra.mxu0 %v1301_v47  ;;  %3330 = vmatprep.mubr.msk.bf16.mxu0 %vm3644_vm1, %v3643_v15 }
 0x9ce   : > { %3340 = vmatprep.subr.bf16.mxu0 %v3643_v15 }
 0x9d4   : > { %3331 = vmatmul.mubr.msk.bf16.vlgmr.msra.gmra.mxu0 %vm1007_vm3, %v1126_v19 }
 0x9d5   : > { %3342 = vmatprep.mubr.msk.bf16.mxu0 %vm3644_vm1, %v3643_v15 }
 0xa8c   : > { %v1241_v50 = vpop.f32.mrf.mxu0 }
 0xa8e   : > { %v3320_v51 = vpop.f32.mrf.mxu0 }
 0xa90   : > { %v1244_v53 = vpop.f32.mrf.mxu0 }
 0xa91   : > { %v1248_v54 = vpack.c.bf16 %v1244_v53, %v1241_v50 }
 0xa92   : > { %v3321_v55 = vpop.f32.mrf.mxu0 }
 0xa93   : > { %3325 = vmatmul.mubr.msk.bf16.vlgmr.msra.gmra.mxu1 %vm1007_vm3, %v1248_v54 }
 0xa94   : > { %3335 = vmatpush3.bf16.xpose.msra.mxu1 %v1352_v56  ;;  %v3933_v57 = vpop.f32.mrf.mxu0  ;;  %3336 = vmatprep.mubr.msk.bf16.mxu1 %vm3644_vm1, %v3643_v15 }
 0xa95   : > { %3346 = vmatprep.subr.bf16.mxu1 %v3643_v15 }
 0xa96   : > { %v3332_v58 = vpop.f32.mrf.mxu0 }
 0xa98   : > { %v3938_v59 = vpop.f32.mrf.mxu0 }
 0xa9a   : > { %v3333_v61 = vpop.f32.mrf.mxu0 }
 0xa9b   : > { %3337 = vmatmul.mubr.msk.bf16.vlgmr.msra.gmra.mxu1 %vm1007_vm3, %v1345_v60 }
 0xa9c   : > { %3348 = vmatprep.mubr.msk.bf16.mxu1 %vm3644_vm1, %v3643_v15  ;;  %3347 = vmatpush3.bf16.msra.mxu1 %v1470_v33 }
 0xa9d   : > { %3358 = vmatprep.subr.bf16.mxu1 %v3643_v15 }
 0xb53   : > { %v3943_v62 = vpop.f32.mrf.mxu1 }
 0xb54   : > { %v1338_v56 = vadd.f32 %v3933_v57, %v3943_v62 }
 0xb55   : > { %v3326_v63 = vpop.f32.mrf.mxu1 }
 0xb57   : > { %v3945_v0 = vpop.f32.mrf.mxu1 }
 0xb58   : > { %v1341_v63 = vadd.f32 %v3938_v59, %v3945_v0  ;;  %v1003_v59 = vld [vmem:[%s4297_s11 + $0xc] sm:$0xf] }
 0xb59   : > { %v3327_v1 = vpop.f32.mrf.mxu1  ;;  %v1641_v0 = vsel %vm1252_vm5, %v1003_v59, 0 }
 0xb5b   : > { %v1388_v2 = vpop.f32.mrf.mxu1 }
 0xb5c   : > { %v1395_v3 = vsel %vm1055_vm4, %v1388_v2, -inf }
 0xb5d   : > { %1396 = vmax.xlane.f32.xlu1 %v1395_v3  ;;  %v3338_v4 = vpop.f32.mrf.mxu1 }
 0xb5f   : > { %v1391_v5 = vpop.f32.mrf.mxu1 }
 0xb60   : > { %v1398_v7 = vsel %vm1055_vm4, %v1391_v5, -inf }
 0xb61   : > { %1399 = vmax.xlane.f32.xlu0 %v1398_v7  ;;  %v3339_v8 = vpop.f32.mrf.mxu1 }
 0xb6e   : > { %1418 = vrot.lane.b32.xlu1 %v3875_v46, %s4313_s6 }
 0xb72   : > { %1515 = vrot.lane.b32.xlu1 %v3875_v46, %s4315_s7  ;;  %s4340_s7 = smov 80  }
 0xbe6   : > { %v1397_v9 = vpop.xlane.xlu1 %1396 }
 0xbe7   : > { %v1401_v10 = vsub.f32 %v1388_v2, %v1397_v9 }
 0xbe9   : > { %v1403_v12 = vmul.f32 1.442695, %v1401_v10 }
 0xbea   : > { %v1419_v13 = vpop.permute.xlu1 %1418  ;;  %v1400_v14 = vpop.xlane.xlu0 %1399 }
 0xbeb   : > { %3559 = vpow2.f32 %v1403_v12  ;;  %v1402_v16 = vsub.f32 %v1391_v5, %v1400_v14  ;;  %3341 = vmatpush3.bf16.msra.mxu0 %v1419_v13 }
 0xbec   : > { %3352 = vmatprep.subr.bf16.mxu0 %v3643_v15 }
 0xbed   : > { %v1405_v17 = vmul.f32 1.442695, %v1402_v16 }
 0xbee   : > { %v1516_v31 = vpop.permute.xlu1 %1515 }
 0xbef   : > { %3561 = vpow2.f32 %v1405_v17 }
 0xbf8   : > { %v3560_v18 = vpop.eup %3559 }
 0xbf9   : > { %v1407_v19 = vsel %vm1055_vm4, %v3560_v18, 0.0 }
 0xbfa   : > { %1408 = vadd.xlane.f32.xlu0 %v1407_v19  ;;  %v3125_v19 = vld [vmem:[%s4298_s12] ss:$0 sm:$0xff] }
 0xbfc   : > { %v3562_v20 = vpop.eup %3561 }
 0xbfd   : > { %v1410_v21 = vsel %vm1055_vm4, %v3562_v20, 0.0 }
 0xbfe   : > { %1411 = vadd.xlane.f32.xlu0 %v1410_v21 }
 0xc14   : > { %1517 = vrot.lane.b32.xlu0 %v3875_v46, %s4316_s2 }
 0xc83   : > { %v1409_v22 = vpop.xlane.xlu0 %1408 }
 0xc84   : > { %3563 = vrcp.f32 %v1409_v22 }
 0xc87   : > { %v1412_v23 = vpop.xlane.xlu0 %1411 }
 0xc88   : > { %3565 = vrcp.f32 %v1412_v23 }
 0xc8b   : > { %v1518_v28 = vpop.permute.xlu0 %1517 }
 0xc8c   : > { %v1523_v30 = vsel %vm1007_vm3, %v1518_v28, 0 }
 0xc91   : > { %v3564_v24 = vpop.eup %3563 }
 0xc92   : > { %v1415_v26 = vmul.f32 %v3564_v24, %v3560_v18 }
 0xc95   : > { %v3566_v25 = vpop.eup %3565 }
 0xc96   : > { %v1416_v27 = vmul.f32 %v3566_v25, %v3562_v20 }
 0xc98   : > { %v1417_v29 = vpack.c.bf16 %v1416_v27, %v1415_v26 }
 0xc9a   : > { %3343 = vmatmul.mubr.msk.bf16.vlgmr.msra.gmra.mxu0 %vm1055_vm4, %v1417_v29 }
 0xc9b   : > { %3353 = vmatpush3.bf16.xpose.msra.mxu0 %v1523_v30  ;;  %3354 = vmatprep.mubr.msk.bf16.mxu0 %vm3644_vm1, %v3643_v15 }
 0xc9c   : > { %3364 = vmatprep.subr.bf16.mxu0 %v3643_v15 }
 0xca2   : > { %3355 = vmatmul.mubr.msk.bf16.vlgmr.msra.gmra.mxu0 %vm1007_vm3, %v1516_v31 }
 0xca3   : > { %3366 = vmatprep.mubr.msk.bf16.mxu0 %vm3644_vm1, %v3643_v15  ;;  %3365 = vmatpush3.bf16.msra.mxu0 %v1641_v0 }
 0xca4   : > { %3378 = vmatprep.subr.bf16.mxu0 %v3643_v15 }
 0xd5a   : > { %v1458_v34 = vpop.f32.mrf.mxu0 }
 0xd5c   : > { %v3344_v35 = vpop.f32.mrf.mxu0 }
 0xd5e   : > { %v1461_v36 = vpop.f32.mrf.mxu0 }
 0xd5f   : > { %v1465_v37 = vpack.c.bf16 %v1461_v36, %v1458_v34 }
 0xd60   : > { %v3345_v38 = vpop.f32.mrf.mxu0 }
 0xd61   : > { %3349 = vmatmul.mubr.msk.bf16.vlgmr.msra.gmra.mxu1 %vm1007_vm3, %v1465_v37  ;;  %v3517_v38 = vld [vmem:[%s4301_s15 + $0x8] sm:$0xff]  }
 0xd62   : > { %v1559_v39 = vpop.f32.mrf.mxu0  ;;  %3360 = vmatprep.mubr.msk.bf16.mxu1 %vm3644_vm1, %v3643_v15 }
 0xd63   : > { %v1566_v40 = vsel %vm1055_vm4, %v1559_v39, -inf }
 0xd64   : > { %1567 = vmax.xlane.f32.xlu1 %v1566_v40  ;;  %v3356_v41 = vpop.f32.mrf.mxu0 }
 0xd66   : > { %v1562_v42 = vpop.f32.mrf.mxu0 }
 0xd67   : > { %v1569_v43 = vsel %vm1055_vm4, %v1562_v42, -inf }
 0xd68   : > { %1570 = vmax.xlane.f32.xlu0 %v1569_v43  ;;  %v3357_v44 = vpop.f32.mrf.mxu0 }
 0xded   : > { %v1568_v45 = vpop.xlane.xlu1 %1567 }
 0xdee   : > { %v1572_v47 = vsub.f32 %v1559_v39, %v1568_v45  ;;  %v3518_v39 = vld [vmem:[%s4301_s15] sm:$0xff]  }
 0xdf0   : > { %v1574_v48 = vmul.f32 1.442695, %v1572_v47 }
 0xdf1   : > { %v1571_v49 = vpop.xlane.xlu0 %1570 }
 0xdf2   : > { %3567 = vpow2.f32 %v1574_v48  ;;  %v1573_v50 = vsub.f32 %v1562_v42, %v1571_v49  ;;  %v3126_v49 = vld [vmem:[%s4299_s13] ss:$0 sm:$0xff] }
 0xdf4   : > { %v1576_v51 = vmul.f32 1.442695, %v1573_v50 }
 0xdf6   : > { %3569 = vpow2.f32 %v1576_v51 }
 0xdff   : > { %v3568_v52 = vpop.eup %3567 }
 0xe00   : > { %v1578_v53 = vsel %vm1055_vm4, %v3568_v52, 0.0 }
 0xe01   : > { %1579 = vadd.xlane.f32.xlu0 %v1578_v53  ;;  %v3127_v53 = vld [vmem:[%s4300_s14] ss:$0 sm:$0xff] }
 0xe03   : > { %v3570_v54 = vpop.eup %3569 }
 0xe04   : > { %v1581_v55 = vsel %vm1055_vm4, %v3570_v54, 0.0 }
 0xe05   : > { %1582 = vadd.xlane.f32.xlu1 %v1581_v55 }
 0xe17   : > { %1589 = vrot.lane.b32.xlu0 %v3875_v46, %s4314_s24 }
 0xe21   : > { %v1506_v58 = vpop.f32.mrf.mxu1 }
 0xe22   : > { %v1513_v60 = vadd.f32 %v1506_v58, %v1338_v56 }
 0xe23   : > { %v3350_v61 = vpop.f32.mrf.mxu1 }
 0xe24   : > { %v3520_v61 = vld [vmem:[%s4303_s17 + $0x10] sm:$0xff]  }
 0xe25   : > { %v1509_v1 = vpop.f32.mrf.mxu1 }
 0xe26   : > { %v1514_v2 = vadd.f32 %v1509_v1, %v1341_v63  ;;  %v3521_v63 = vld [vmem:[%s4303_s17 + $0x8] sm:$0xff]   ;;  %v3522_v1 = vld [vmem:[%s4303_s17] sm:$0xff]  }
 0xe27   : > { %v3351_v3 = vpop.f32.mrf.mxu1 }
 0xe8a   : > { %v1580_v4 = vpop.xlane.xlu0 %1579 }
 0xe8b   : > { %3571 = vrcp.f32 %v1580_v4 }
 0xe8e   : > { %v1583_v5 = vpop.xlane.xlu1 %1582  ;;  %v1590_v7 = vpop.permute.xlu0 %1589 }
 0xe8f   : > { %3573 = vrcp.f32 %v1583_v5  ;;  %3359 = vmatpush3.bf16.msra.mxu1 %v1590_v7 }
 0xe90   : > { %3370 = vmatprep.subr.bf16.mxu1 %v3643_v15 }
 0xe98   : > { %v3572_v46 = vpop.eup %3571 }
 0xe99   : > { %v1586_v57 = vmul.f32 %v3572_v46, %v3568_v52 }
 0xe9c   : > { %v3574_v8 = vpop.eup %3573 }
 0xe9d   : > { %v1587_v62 = vmul.f32 %v3574_v8, %v3570_v54 }
 0xe9f   : > { %v1588_v9 = vpack.c.bf16 %v1587_v62, %v1586_v57 }
 0xea1   : > { %3361 = vmatmul.mubr.msk.bf16.vlgmr.msra.gmra.mxu1 %vm1055_vm4, %v1588_v9 }
 0xea2   : > { %3374 = vmatprep.mubr.msk.bf16.mxu1 %vm3644_vm1, %v3643_v15  ;;  %3371 = vmatpush3.bf16.msra.mxu1 %v3517_v38 }
 0xea3   : > { %3372 = vmatprep.subr.bf16.mxu1 %v3643_v15 }
 0xea6   : > { %3373 = vmatpush3.bf16.msra.mxu1 %v3518_v39 }
 0xea7   : > { %3390 = vmatprep.subr.bf16.mxu1 %v3643_v15 }
 0xf61   : > { %v1629_v10 = vpop.f32.mrf.mxu1 }
 0xf63   : > { %v3362_v12 = vpop.f32.mrf.mxu1 }
 0xf65   : > { %v1632_v13 = vpop.f32.mrf.mxu1 }
 0xf66   : > { %v1636_v14 = vpack.c.bf16 %v1632_v13, %v1629_v10 }
 0xf67   : > { %v3363_v16 = vpop.f32.mrf.mxu1 }
 0xf68   : > { %3367 = vmatmul.mubr.msk.bf16.vlgmr.msra.gmra.mxu0 %vm1007_vm3, %v1636_v14 }
 0xf69   : > { %3386 = vmatprep.mubr.msk.bf16.mxu0 %vm3644_vm1, %v3643_v15 }
0x1028   : > { %v1677_v17 = vpop.f32.mrf.mxu0 }
0x1029   : > { %v1684_v18 = vadd.f32 %v1677_v17, %v1513_v60  ;;  %v3519_v60 = vld [vmem:[%s4303_s17 + $0x18] sm:$0xff]  }
0x102a   : > { %v3368_v20 = vpop.f32.mrf.mxu0  ;;  %3379 = vmatpush3.bf16.msra.mxu0 %v3519_v60 }
0x102b   : > { %v1686_v21 = vadd.f32 %v1684_v18, %v3843_v6  ;;  %3380 = vmatprep.subr.bf16.mxu0 %v3643_v15 }
0x102c   : > { %v1680_v22 = vpop.f32.mrf.mxu0 }
0x102d   : > { %v4000_v23 = vadd.f32 %v3125_v19, %v1686_v21  ;;  %v1685_v24 = vadd.f32 %v1680_v22, %v1514_v2  ;;  %v3128_v2 = vld [vmem:[%s4302_s16] ss:$0 sm:$0xff] }
0x102e   : > { %v3369_v25 = vpop.f32.mrf.mxu0  ;;  %3381 = vmatpush3.bf16.msra.mxu0 %v3520_v61 }
0x102f   : > { %v1687_v26 = vadd.f32 %v1685_v24, %v3850_v11  ;;  %v1699_v27 = vsel %vm846_vm2, %v4000_v23, 0.0  ;;  %3382 = vmatprep.subr.bf16.mxu0 %v3643_v15 }
0x1030   : > { %1700 = vadd.xlane.f32.xlu1 %v1699_v27 }
0x1031   : > { %v4005_v28 = vadd.f32 %v3125_v19, %v1687_v26 }
0x1032   : > { %3383 = vmatpush3.bf16.msra.mxu0 %v3521_v63  ;;  %v3141_v63 = vld [vmem:[%s4295_s9 + $0x1] ss:$0 sm:$0xff] }
0x1033   : > { %v1702_v29 = vsel %vm846_vm2, %v4005_v28, 0.0  ;;  %3384 = vmatprep.subr.bf16.mxu0 %v3643_v15 }
0x1034   : > { %1703 = vadd.xlane.f32.xlu1 %v1702_v29  ;;  %v3137_v29 = vld [vmem:[%s4304_s18] ss:$0 sm:$0xff] }
0x1036   : > { %3385 = vmatpush3.bf16.msra.mxu0 %v3522_v1 }
0x1037   : > { %3404 = vmatprep.subr.bf16.mxu0 %v3643_v15 }
0x10b9   : > { %v1701_v30 = vpop.xlane.xlu1 %1700 }
0x10ba   : > { %v1705_v31 = vmul.f32 0.03125, %v1701_v30 }
0x10bc   : > { %v1707_v6 = vsub.f32 %v4000_v23, %v1705_v31 }
0x10bd   : > { %v1704_v32 = vpop.xlane.xlu1 %1703 }
0x10be   : > { %v1706_v33 = vmul.f32 0.03125, %v1704_v32  ;;  %v1709_v34 = vmul.f32 %v1707_v6, %v1707_v6 }
0x10c0   : > { %v1708_v35 = vsub.f32 %v4005_v28, %v1706_v33  ;;  %v1711_v11 = vsel %vm846_vm2, %v1709_v34, 0.0 }
0x10c1   : > { %1712 = vadd.xlane.f32.xlu1 %v1711_v11 }
0x10c2   : > { %v1710_v36 = vmul.f32 %v1708_v35, %v1708_v35 }
0x10c4   : > { %v1714_v37 = vsel %vm846_vm2, %v1710_v36, 0.0 }
0x10c5   : > { %1715 = vadd.xlane.f32.xlu1 %v1714_v37 }
0x114a   : > { %v1713_v40 = vpop.xlane.xlu1 %1712 }
0x114b   : > { %v1717_v41 = vmul.f32 0.03125, %v1713_v40 }
0x114d   : > { %v1719_v42 = vadd.f32 1e-05, %v1717_v41 }
0x114e   : > { %v1716_v43 = vpop.xlane.xlu1 %1715 }
0x114f   : > { %3575 = vrsqrt.f32 %v1719_v42  ;;  %v1718_v44 = vmul.f32 0.03125, %v1716_v43 }
0x1151   : > { %v1720_v45 = vadd.f32 1e-05, %v1718_v44 }
0x1153   : > { %3577 = vrsqrt.f32 %v1720_v45  ;;  %v3523_v45 = vld [vmem:[%s4296_s10 + $0x18] sm:$0xff]  }
0x115c   : > { %v3576_v47 = vpop.eup %3575 }
0x115d   : > { %v1723_v48 = vmul.f32 %v3576_v47, %v1707_v6  ;;  %v3524_v47 = vld [vmem:[%s4296_s10 + $0x10] sm:$0xff]  }
0x115f   : > { %v1731_v52 = vmul.f32 %v3126_v49, %v1723_v48 }
0x1160   : > { %v3578_v50 = vpop.eup %3577 }
0x1161   : > { %v1724_v51 = vmul.f32 %v3578_v50, %v1708_v35  ;;  %v1739_v55 = vadd.f32 %v3127_v53, %v1731_v52 }
0x1163   : > { %v1732_v54 = vmul.f32 %v3126_v49, %v1724_v51 }
0x1165   : > { %v1740_v56 = vadd.f32 %v3127_v53, %v1732_v54 }
0x1167   : > { %v1745_v58 = vpack.c.bf16 %v1740_v56, %v1739_v55  ;;  %v3140_v56 = vld [vmem:[%s4294_s8 + $0x1] ss:$0 sm:$0xff] }
0x1169   : > { %3375 = vmatmul.mubr.msk.bf16.vlgmr.msra.gmra.mxu1 %vm846_vm2, %v1745_v58 }
0x116a   : > { %3394 = vmatprep.mubr.msk.bf16.mxu1 %vm3644_vm1, %v3643_v15  ;;  %3391 = vmatpush3.bf16.msra.mxu1 %v3523_v45 }
0x116b   : > { %3392 = vmatprep.subr.bf16.mxu1 %v3643_v15 }
0x116e   : > { %3393 = vmatpush3.bf16.msra.mxu1 %v3524_v47 }
0x116f   : > { %3398 = vmatprep.subr.bf16.mxu1 %v3643_v15 }
0x1229   : > { %v1802_v3 = vpop.f32.mrf.mxu1 }
0x122a   : > { %v1803_v4 = vadd.f32 %v3128_v2, %v1802_v3 }
0x122b   : > { %v3376_v5 = vpop.f32.mrf.mxu1 }
0x122c   : > { %v1811_v7 = vmul.f32 0.044715, %v1803_v4  ;;  %v1809_v20 = vmul.f32 0.5, %v1803_v4 }
0x122d   : > { %v1805_v46 = vpop.f32.mrf.mxu1 }
0x122e   : > { %v1813_v8 = vmul.f32 %v1811_v7, %v1803_v4  ;;  %v1806_v57 = vadd.f32 %v3128_v2, %v1805_v46 }
0x122f   : > { %v3377_v62 = vpop.f32.mrf.mxu1 }
0x1230   : > { %v1815_v9 = vmul.f32 %v1813_v8, %v1803_v4  ;;  %v1812_v59 = vmul.f32 0.044715, %v1806_v57  ;;  %v1810_v21 = vmul.f32 0.5, %v1806_v57 }
0x1232   : > { %v1817_v0 = vadd.f32 %v1815_v9, %v1803_v4  ;;  %v1814_v10 = vmul.f32 %v1812_v59, %v1806_v57 }
0x1234   : > { %v1819_v12 = vmul.f32 0.7978846, %v1817_v0  ;;  %v1816_v13 = vmul.f32 %v1814_v10, %v1806_v57 }
0x1236   : > { %3579 = vtanh.f32 %v1819_v12  ;;  %v1818_v14 = vadd.f32 %v1816_v13, %v1806_v57 }
0x1238   : > { %v1820_v16 = vmul.f32 0.7978846, %v1818_v14 }
0x123a   : > { %3581 = vtanh.f32 %v1820_v16 }
0x1243   : > { %v3580_v17 = vpop.eup %3579 }
0x1244   : > { %v1823_v18 = vadd.f32 1.0, %v3580_v17 }
0x1246   : > { %v1825_v24 = vmul.f32 %v1823_v18, %v1809_v20 }
0x1247   : > { %v3582_v19 = vpop.eup %3581 }
0x1248   : > { %v1824_v22 = vadd.f32 1.0, %v3582_v19 }
0x124a   : > { %v1826_v25 = vmul.f32 %v1824_v22, %v1810_v21 }
0x124c   : > { %v1835_v26 = vpack.c.bf16 %v1826_v25, %v1825_v24 }
0x124e   : > { %3387 = vmatmul.mubr.msk.bf16.vlgmr.msra.gmra.mxu0 %vm716_vm0, %v1835_v26 }
0x124f   : > { %3406 = vmatprep.mubr.msk.bf16.mxu0 %vm3644_vm1, %v3643_v15 }
0x130e   : > { %v1897_v27 = vpop.f32.mrf.mxu0 }
0x130f   : > { %v1904_v30 = vadd.f32 %v1897_v27, %v4000_v23 }
0x1310   : > { %v3388_v31 = vpop.f32.mrf.mxu0 }
0x1311   : > { %v4056_v6 = vadd.f32 %v3137_v29, %v1904_v30 }
0x1312   : > { %v1900_v32 = vpop.f32.mrf.mxu0 }
0x1313   : > { %v1905_v33 = vadd.f32 %v1900_v32, %v4005_v28  ;;  %v1919_v34 = vsel %vm846_vm2, %v4056_v6, 0.0 }
0x1314   : > { %1920 = vadd.xlane.f32.xlu1 %v1919_v34  ;;  %v3389_v35 = vpop.f32.mrf.mxu0 }
0x1315   : > { %v4061_v11 = vadd.f32 %v3137_v29, %v1905_v33 }
0x1317   : > { %v1922_v36 = vsel %vm846_vm2, %v4061_v11, 0.0 }
0x1318   : > { %1923 = vadd.xlane.f32.xlu1 %v1922_v36 }
0x139d   : > { %v1921_v37 = vpop.xlane.xlu1 %1920 }
0x139e   : > { %v1925_v38 = vmul.f32 0.03125, %v1921_v37 }
0x13a0   : > { %v1927_v23 = vsub.f32 %v4056_v6, %v1925_v38 }
0x13a1   : > { %v1924_v39 = vpop.xlane.xlu1 %1923 }
0x13a2   : > { %v1926_v40 = vmul.f32 0.03125, %v1924_v39  ;;  %v1929_v41 = vmul.f32 %v1927_v23, %v1927_v23 }
0x13a4   : > { %v1928_v28 = vsub.f32 %v4061_v11, %v1926_v40  ;;  %v1931_v42 = vsel %vm846_vm2, %v1929_v41, 0.0 }
0x13a5   : > { %1932 = vadd.xlane.f32.xlu0 %v1931_v42 }
0x13a6   : > { %v1930_v43 = vmul.f32 %v1928_v28, %v1928_v28 }
0x13a8   : > { %v1934_v44 = vsel %vm846_vm2, %v1930_v43, 0.0 }
0x13a9   : > { %1935 = vadd.xlane.f32.xlu1 %v1934_v44 }
0x142e   : > { %v1933_v48 = vpop.xlane.xlu0 %1932 }
0x142f   : > { %v1937_v49 = vmul.f32 0.03125, %v1933_v48 }
0x1431   : > { %v1939_v50 = vadd.f32 1e-05, %v1937_v49 }
0x1432   : > { %v1936_v51 = vpop.xlane.xlu1 %1935 }
0x1433   : > { %3583 = vrsqrt.f32 %v1939_v50  ;;  %v1938_v52 = vmul.f32 0.03125, %v1936_v51 }
0x1435   : > { %v1940_v53 = vadd.f32 1e-05, %v1938_v52 }
0x1437   : > { %3585 = vrsqrt.f32 %v1940_v53 }
0x1440   : > { %v3584_v54 = vpop.eup %3583 }
0x1441   : > { %v1943_v55 = vmul.f32 %v3584_v54, %v1927_v23 }
0x1443   : > { %v1951_v61 = vmul.f32 %v3140_v56, %v1943_v55 }
0x1444   : > { %v3586_v58 = vpop.eup %3585 }
0x1445   : > { %v1944_v60 = vmul.f32 %v3586_v58, %v1928_v28  ;;  %v1959_v2 = vadd.f32 %v3141_v63, %v1951_v61 }
0x1447   : > { %v1952_v1 = vmul.f32 %v3140_v56, %v1944_v60 }
0x1449   : > { %v1960_v3 = vadd.f32 %v3141_v63, %v1952_v1 }
0x144b   : > { %v1966_v4 = vpack.c.bf16 %v1960_v3, %v1959_v2  ;;  %v3149_v2 = vld [vmem:[%s4297_s11 + $0x10] sm:$0xf] }
0x144c   : > { %v2323_v3 = vsel %vm1252_vm5, %v3149_v2, 0 }
0x144d   : > { %3395 = vmatmul.mubr.msk.bf16.vlgmr.msra.gmra.mxu1 %vm846_vm2, %v1966_v4  ;;  %v3150_v4 = vld [vmem:[%s4297_s11 + $0x14] sm:$0xf] }
0x144e   : > { %3400 = vmatprep.mubr.msk.bf16.mxu1 %vm3644_vm1, %v3643_v15 }
0x150d   : > { %v2016_v5 = vpop.f32.mrf.mxu1 }
0x150f   : > { %v3396_v7 = vpop.f32.mrf.mxu1 }
0x1511   : > { %v2019_v46 = vpop.f32.mrf.mxu1 }
0x1512   : > { %v4086_v8 = vpack.c.bf16 %v2019_v46, %v2016_v5  ;;  %v2276_v5 = vsel %vm1252_vm5, %v3150_v4, 0 }
0x1513   : > { %v3397_v57 = vpop.f32.mrf.mxu1 }
0x1514   : > { %2030 = vrot.lane.b32.xlu1 %v4086_v8, %s3645_s29  ;;  %s4337_s29 = smov 56  }
0x1518   : > { %2152 = vrot.lane.b32.xlu1 %v4086_v8, %s3646_s3  ;;  %s4338_s3 = smov 112  }
0x151c   : > { %2150 = vrot.lane.b32.xlu1 %v4086_v8, %s3647_s0  ;;  %s4339_s0 = smov 64  }
0x1586   : > { %v2031_v62 = vpop.permute.xlu1 %2030 }
0x1587   : > { %v2036_v9 = vsel %vm1007_vm3, %v2031_v62, 0 }
0x1588   : > { %3399 = vmatpush3.bf16.xpose.msra.mxu1 %v2036_v9 }
0x1589   : > { %3410 = vmatprep.subr.bf16.mxu1 %v3643_v15 }
0x158a   : > { %v2153_v59 = vpop.permute.xlu1 %2152 }
0x158b   : > { %v2158_v0 = vsel %vm1007_vm3, %v2153_v59, 0 }
0x158e   : > { %v2151_v10 = vpop.permute.xlu1 %2150 }
0x158f   : > { %3401 = vmatmul.mubr.msk.bf16.vlgmr.msra.gmra.mxu1 %vm1007_vm3, %v4086_v8 }
0x1590   : > { %3411 = vmatpush3.bf16.xpose.msra.mxu1 %v2158_v0  ;;  %3412 = vmatprep.mubr.msk.bf16.mxu1 %vm3644_vm1, %v3643_v15 }
0x1591   : > { %3422 = vmatprep.subr.bf16.mxu1 %v3643_v15 }
0x1597   : > { %3413 = vmatmul.mubr.msk.bf16.vlgmr.msra.gmra.mxu1 %vm1007_vm3, %v2151_v10 }
0x1598   : > { %3424 = vmatprep.mubr.msk.bf16.mxu1 %vm3644_vm1, %v3643_v15  ;;  %3423 = vmatpush3.bf16.msra.mxu1 %v2276_v5 }
0x1599   : > { %3434 = vmatprep.subr.bf16.mxu1 %v3643_v15 }
0x164f   : > { %v2072_v12 = vpop.f32.mrf.mxu1 }
0x1650   : > { %v2079_v13 = vsel %vm1055_vm4, %v2072_v12, -inf }
0x1651   : > { %2080 = vmax.xlane.f32.xlu0 %v2079_v13  ;;  %v3402_v14 = vpop.f32.mrf.mxu1 }
0x1653   : > { %v2075_v16 = vpop.f32.mrf.mxu1 }
0x1654   : > { %v2082_v17 = vsel %vm1055_vm4, %v2075_v16, -inf }
0x1655   : > { %2083 = vmax.xlane.f32.xlu1 %v2082_v17  ;;  %v3403_v18 = vpop.f32.mrf.mxu1 }
0x1657   : > { %v2194_v19 = vpop.f32.mrf.mxu1 }
0x1658   : > { %v2201_v20 = vsel %vm1055_vm4, %v2194_v19, -inf }
0x1659   : > { %2202 = vmax.xlane.f32.xlu0 %v2201_v20  ;;  %v3414_v21 = vpop.f32.mrf.mxu1 }
0x165b   : > { %v2197_v22 = vpop.f32.mrf.mxu1 }
0x165c   : > { %v2204_v24 = vsel %vm1055_vm4, %v2197_v22, -inf }
0x165d   : > { %2205 = vmax.xlane.f32.xlu0 %v2204_v24  ;;  %v3415_v25 = vpop.f32.mrf.mxu1 }
0x1666   : > { %2224 = vrot.lane.b32.xlu1 %v4086_v8, %s4337_s29 }
0x166a   : > { %2366 = vrot.lane.b32.xlu1 %v4086_v8, %s4338_s3 }
0x16da   : > { %v2081_v26 = vpop.xlane.xlu0 %2080 }
0x16db   : > { %v2085_v27 = vsub.f32 %v2072_v12, %v2081_v26 }
0x16dd   : > { %v2087_v29 = vmul.f32 1.442695, %v2085_v27 }
0x16de   : > { %v2084_v30 = vpop.xlane.xlu1 %2083 }
0x16df   : > { %3587 = vpow2.f32 %v2087_v29  ;;  %v2086_v31 = vsub.f32 %v2075_v16, %v2084_v30 }
0x16e1   : > { %v2089_v32 = vmul.f32 1.442695, %v2086_v31 }
0x16e2   : > { %v2203_v33 = vpop.xlane.xlu0 %2202  ;;  %v2225_v56 = vpop.permute.xlu1 %2224 }
0x16e3   : > { %3589 = vpow2.f32 %v2089_v32  ;;  %v2207_v34 = vsub.f32 %v2194_v19, %v2203_v33 }
0x16e5   : > { %v2209_v35 = vmul.f32 1.442695, %v2207_v34 }
0x16e6   : > { %v2206_v36 = vpop.xlane.xlu0 %2205  ;;  %v2367_v17 = vpop.permute.xlu1 %2366 }
0x16e7   : > { %3591 = vpow2.f32 %v2209_v35  ;;  %v2208_v37 = vsub.f32 %v2197_v22, %v2206_v36 }
0x16e9   : > { %v2211_v38 = vmul.f32 1.442695, %v2208_v37 }
0x16eb   : > { %3593 = vpow2.f32 %v2211_v38 }
0x16ec   : > { %v3588_v23 = vpop.eup %3587 }
0x16ed   : > { %v2091_v39 = vsel %vm1055_vm4, %v3588_v23, 0.0 }
0x16ee   : > { %2092 = vadd.xlane.f32.xlu0 %v2091_v39 }
0x16f0   : > { %v3590_v40 = vpop.eup %3589 }
0x16f1   : > { %v2094_v41 = vsel %vm1055_vm4, %v3590_v40, 0.0 }
0x16f2   : > { %2095 = vadd.xlane.f32.xlu0 %v2094_v41 }
0x16f4   : > { %v3592_v28 = vpop.eup %3591 }
0x16f5   : > { %v2213_v42 = vsel %vm1055_vm4, %v3592_v28, 0.0 }
0x16f6   : > { %2214 = vadd.xlane.f32.xlu0 %v2213_v42 }
0x16f8   : > { %v3594_v43 = vpop.eup %3593 }
0x16f9   : > { %v2216_v44 = vsel %vm1055_vm4, %v3594_v43, 0.0 }
0x16fa   : > { %2217 = vadd.xlane.f32.xlu0 %v2216_v44 }
0x1710   : > { %2102 = vrot.lane.b32.xlu0 %v4086_v8, %s4339_s0  ;;  %s4344_s0 = smov 40  }
0x1714   : > { %2368 = vrot.lane.b32.xlu0 %v4086_v8, %s4340_s7 }
0x1777   : > { %v2093_v45 = vpop.xlane.xlu0 %2092 }
0x1778   : > { %3595 = vrcp.f32 %v2093_v45 }
0x177b   : > { %v2096_v47 = vpop.xlane.xlu0 %2095 }
0x177c   : > { %3597 = vrcp.f32 %v2096_v47 }
0x177f   : > { %v2215_v48 = vpop.xlane.xlu0 %2214 }
0x1780   : > { %3599 = vrcp.f32 %v2215_v48 }
0x1783   : > { %v2218_v49 = vpop.xlane.xlu0 %2217 }
0x1784   : > { %3601 = vrcp.f32 %v2218_v49 }
0x1785   : > { %v3596_v50 = vpop.eup %3595 }
0x1786   : > { %v2099_v53 = vmul.f32 %v3596_v50, %v3588_v23 }
0x1787   : > { %v2103_v51 = vpop.permute.xlu0 %2102 }
0x1788   : > { %3405 = vmatpush3.bf16.msra.mxu0 %v2103_v51 }
0x1789   : > { %v3598_v52 = vpop.eup %3597  ;;  %3416 = vmatprep.subr.bf16.mxu0 %v3643_v15 }
0x178a   : > { %v2100_v54 = vmul.f32 %v3598_v52, %v3590_v40 }
0x178b   : > { %v2369_v10 = vpop.permute.xlu0 %2368 }
0x178c   : > { %v2101_v55 = vpack.c.bf16 %v2100_v54, %v2099_v53  ;;  %v2374_v16 = vsel %vm1007_vm3, %v2369_v10, 0 }
0x178d   : > { %v3600_v58 = vpop.eup %3599 }
0x178e   : > { %3407 = vmatmul.mubr.msk.bf16.vlgmr.msra.gmra.mxu0 %vm1055_vm4, %v2101_v55  ;;  %v2221_v61 = vmul.f32 %v3600_v58, %v3592_v28 }
0x178f   : > { %3417 = vmatpush3.bf16.msra.mxu0 %v2225_v56  ;;  %3418 = vmatprep.mubr.msk.bf16.mxu0 %vm3644_vm1, %v3643_v15  ;;  %v3151_v56 = vld [vmem:[%s4297_s11 + $0x18] sm:$0xf] }
0x1790   : > { %3428 = vmatprep.subr.bf16.mxu0 %v3643_v15  ;;  %v2492_v58 = vsel %vm1252_vm5, %v3151_v56, 0 }
0x1791   : > { %v3602_v60 = vpop.eup %3601 }
0x1792   : > { %v2222_v63 = vmul.f32 %v3602_v60, %v3594_v43 }
0x1794   : > { %v2223_v1 = vpack.c.bf16 %v2222_v63, %v2221_v61 }
0x1796   : > { %3419 = vmatmul.mubr.msk.bf16.vlgmr.msra.gmra.mxu0 %vm1055_vm4, %v2223_v1 }
0x1797   : > { %3430 = vmatprep.mubr.msk.bf16.mxu0 %vm3644_vm1, %v3643_v15  ;;  %3429 = vmatpush3.bf16.msra.mxu0 %v2323_v3 }
0x1798   : > { %3440 = vmatprep.subr.bf16.mxu0 %v3643_v15 }
0x184e   : > { %v2142_v7 = vpop.f32.mrf.mxu0 }
0x1850   : > { %v3408_v46 = vpop.f32.mrf.mxu0 }
0x1852   : > { %v2145_v57 = vpop.f32.mrf.mxu0 }
0x1853   : > { %v2149_v62 = vpack.c.bf16 %v2145_v57, %v2142_v7 }
0x1854   : > { %v3409_v9 = vpop.f32.mrf.mxu0 }
0x1855   : > { %3431 = vmatmul.mubr.msk.bf16.vlgmr.msra.gmra.mxu0 %vm1007_vm3, %v2149_v62 }
0x1856   : > { %v2264_v59 = vpop.f32.mrf.mxu0  ;;  %3442 = vmatprep.mubr.msk.bf16.mxu0 %vm3644_vm1, %v3643_v15 }
0x1858   : > { %v3420_v0 = vpop.f32.mrf.mxu0 }
0x185a   : > { %v2267_v12 = vpop.f32.mrf.mxu0 }
0x185b   : > { %v2271_v13 = vpack.c.bf16 %v2267_v12, %v2264_v59 }
0x185c   : > { %v3421_v14 = vpop.f32.mrf.mxu0 }
0x185d   : > { %3425 = vmatmul.mubr.msk.bf16.vlgmr.msra.gmra.mxu1 %vm1007_vm3, %v2271_v13 }
0x185e   : > { %3435 = vmatpush3.bf16.xpose.msra.mxu1 %v2374_v16  ;;  %3436 = vmatprep.mubr.msk.bf16.mxu1 %vm3644_vm1, %v3643_v15 }
0x185f   : > { %3446 = vmatprep.subr.bf16.mxu1 %v3643_v15 }
0x1865   : > { %3437 = vmatmul.mubr.msk.bf16.vlgmr.msra.gmra.mxu1 %vm1007_vm3, %v2367_v17 }
0x1866   : > { %3448 = vmatprep.mubr.msk.bf16.mxu1 %vm3644_vm1, %v3643_v15  ;;  %3447 = vmatpush3.bf16.msra.mxu1 %v2492_v58 }
0x1867   : > { %3458 = vmatprep.subr.bf16.mxu1 %v3643_v15 }
0x1915   : > { %v2359_v18 = vpop.f32.mrf.mxu0 }
0x1917   : > { %v3432_v19 = vpop.f32.mrf.mxu0 }
0x1919   : > { %v2362_v20 = vpop.f32.mrf.mxu0 }
0x191b   : > { %v3433_v21 = vpop.f32.mrf.mxu0 }
0x191d   : > { %v2312_v22 = vpop.f32.mrf.mxu1 }
0x191e   : > { %v4150_v24 = vadd.f32 %v2359_v18, %v2312_v22 }
0x191f   : > { %v3426_v25 = vpop.f32.mrf.mxu1 }
0x1921   : > { %v2315_v26 = vpop.f32.mrf.mxu1 }
0x1922   : > { %v4152_v27 = vadd.f32 %v2362_v20, %v2315_v26 }
0x1923   : > { %v3427_v29 = vpop.f32.mrf.mxu1 }
0x1925   : > { %v2410_v30 = vpop.f32.mrf.mxu1 }
0x1926   : > { %v2417_v31 = vsel %vm1055_vm4, %v2410_v30, -inf }
0x1927   : > { %2418 = vmax.xlane.f32.xlu0 %v2417_v31  ;;  %v3438_v32 = vpop.f32.mrf.mxu1 }
0x1929   : > { %v2413_v33 = vpop.f32.mrf.mxu1 }
0x192a   : > { %v2420_v34 = vsel %vm1055_vm4, %v2413_v33, -inf }
0x192b   : > { %2421 = vmax.xlane.f32.xlu1 %v2420_v34  ;;  %v3439_v35 = vpop.f32.mrf.mxu1 }
0x193c   : > { %2539 = vrot.lane.b32.xlu1 %v4086_v8, %s4341_s5 }
0x1940   : > { %2537 = vrot.lane.b32.xlu1 %v4086_v8, %s4342_s1 }
0x19b0   : > { %v2419_v36 = vpop.xlane.xlu0 %2418 }
0x19b1   : > { %v2423_v37 = vsub.f32 %v2410_v30, %v2419_v36 }
0x19b3   : > { %v2425_v38 = vmul.f32 1.442695, %v2423_v37 }
0x19b4   : > { %v2422_v23 = vpop.xlane.xlu1 %2421 }
0x19b5   : > { %3603 = vpow2.f32 %v2425_v38  ;;  %v2424_v39 = vsub.f32 %v2413_v33, %v2422_v23 }
0x19b7   : > { %v2427_v40 = vmul.f32 1.442695, %v2424_v39 }
0x19b8   : > { %v2540_v52 = vpop.permute.xlu1 %2539 }
0x19b9   : > { %3605 = vpow2.f32 %v2427_v40  ;;  %v2545_v54 = vsel %vm1007_vm3, %v2540_v52, 0 }
0x19bc   : > { %v2538_v55 = vpop.permute.xlu1 %2537 }
0x19c2   : > { %v3604_v41 = vpop.eup %3603 }
0x19c3   : > { %v2429_v28 = vsel %vm1055_vm4, %v3604_v41, 0.0 }
0x19c4   : > { %2430 = vadd.xlane.f32.xlu0 %v2429_v28 }
0x19c6   : > { %v3606_v42 = vpop.eup %3605 }
0x19c7   : > { %v2432_v43 = vsel %vm1055_vm4, %v3606_v42, 0.0 }
0x19c8   : > { %2433 = vadd.xlane.f32.xlu0 %v2432_v43 }
0x19de   : > { %2440 = vrot.lane.b32.xlu0 %v4086_v8, %s4343_s26 }
0x1a4d   : > { %v2431_v44 = vpop.xlane.xlu0 %2430 }
0x1a4e   : > { %3607 = vrcp.f32 %v2431_v44 }
0x1a51   : > { %v2434_v45 = vpop.xlane.xlu0 %2433 }
0x1a52   : > { %3609 = vrcp.f32 %v2434_v45 }
0x1a55   : > { %v2441_v47 = vpop.permute.xlu0 %2440 }
0x1a56   : > { %3441 = vmatpush3.bf16.msra.mxu0 %v2441_v47 }
0x1a57   : > { %3452 = vmatprep.subr.bf16.mxu0 %v3643_v15 }
0x1a5b   : > { %v3608_v48 = vpop.eup %3607 }
0x1a5c   : > { %v2437_v50 = vmul.f32 %v3608_v48, %v3604_v41  ;;  %v3166_v41 = vld [vmem:[%s4298_s12 + $0x1] ss:$0 sm:$0xff] }
0x1a5f   : > { %v3610_v49 = vpop.eup %3609 }
0x1a60   : > { %v2438_v51 = vmul.f32 %v3610_v49, %v3606_v42 }
0x1a62   : > { %v2439_v53 = vpack.c.bf16 %v2438_v51, %v2437_v50 }
0x1a64   : > { %3443 = vmatmul.mubr.msk.bf16.vlgmr.msra.gmra.mxu0 %vm1055_vm4, %v2439_v53 }
0x1a65   : > { %3453 = vmatpush3.bf16.xpose.msra.mxu0 %v2545_v54  ;;  %3454 = vmatprep.mubr.msk.bf16.mxu0 %vm3644_vm1, %v3643_v15 }
0x1a66   : > { %3464 = vmatprep.subr.bf16.mxu0 %v3643_v15 }
0x1a6c   : > { %3455 = vmatmul.mubr.msk.bf16.vlgmr.msra.gmra.mxu0 %vm1007_vm3, %v2538_v55 }
0x1a6d   : > { %3466 = vmatprep.mubr.msk.bf16.mxu0 %vm3644_vm1, %v3643_v15 }
0x1b24   : > { %v2480_v60 = vpop.f32.mrf.mxu0 }
0x1b26   : > { %v3444_v61 = vpop.f32.mrf.mxu0 }
0x1b28   : > { %v2483_v63 = vpop.f32.mrf.mxu0 }
0x1b29   : > { %v2487_v1 = vpack.c.bf16 %v2483_v63, %v2480_v60  ;;  %v3525_v63 = vld [vmem:[%s4301_s15 + $0x18] sm:$0xff]  }
0x1b2a   : > { %v3445_v2 = vpop.f32.mrf.mxu0 }
0x1b2b   : > { %3449 = vmatmul.mubr.msk.bf16.vlgmr.msra.gmra.mxu1 %vm1007_vm3, %v2487_v1  ;;  %v3526_v1 = vld [vmem:[%s4301_s15 + $0x10] sm:$0xff]  }
0x1b2c   : > { %v2581_v3 = vpop.f32.mrf.mxu0  ;;  %3460 = vmatprep.mubr.msk.bf16.mxu1 %vm3644_vm1, %v3643_v15 }
0x1b2d   : > { %v2588_v4 = vsel %vm1055_vm4, %v2581_v3, -inf }
0x1b2e   : > { %2589 = vmax.xlane.f32.xlu1 %v2588_v4  ;;  %v3456_v5 = vpop.f32.mrf.mxu0 }
0x1b30   : > { %v2584_v7 = vpop.f32.mrf.mxu0 }
0x1b31   : > { %v2591_v46 = vsel %vm1055_vm4, %v2584_v7, -inf }
0x1b32   : > { %2592 = vmax.xlane.f32.xlu0 %v2591_v46  ;;  %v3457_v57 = vpop.f32.mrf.mxu0 }
0x1b3f   : > { %2611 = vrot.lane.b32.xlu1 %v4086_v8, %s4344_s0  ;;  %s4345_s0 = sshll.u32 %s4347_s30, 4 }
0x1b40   : > { %s710_s2 = scalar_lea.vmem %s4309_s23, %s4345_s0 }
0x1bb7   : > { %v2590_v62 = vpop.xlane.xlu1 %2589 }
0x1bb8   : > { %v2594_v9 = vsub.f32 %v2581_v3, %v2590_v62 }
0x1bba   : > { %v2596_v59 = vmul.f32 1.442695, %v2594_v9  ;;  %v3169_v9 = vld [vmem:[%s4299_s13 + $0x1] ss:$0 sm:$0xff] }
0x1bbb   : > { %v2612_v0 = vpop.permute.xlu1 %2611  ;;  %v2593_v10 = vpop.xlane.xlu0 %2592 }
0x1bbc   : > { %3611 = vpow2.f32 %v2596_v59  ;;  %v2595_v12 = vsub.f32 %v2584_v7, %v2593_v10  ;;  %3459 = vmatpush3.bf16.msra.mxu1 %v2612_v0 }
0x1bbd   : > { %3470 = vmatprep.subr.bf16.mxu1 %v3643_v15 }
0x1bbe   : > { %v2598_v13 = vmul.f32 1.442695, %v2595_v12  ;;  %v3170_v12 = vld [vmem:[%s4300_s14 + $0x1] ss:$0 sm:$0xff] }
0x1bc0   : > { %3613 = vpow2.f32 %v2598_v13 }
0x1bc9   : > { %v3612_v14 = vpop.eup %3611 }
0x1bca   : > { %v2600_v16 = vsel %vm1055_vm4, %v3612_v14, 0.0 }
0x1bcb   : > { %2601 = vadd.xlane.f32.xlu0 %v2600_v16 }
0x1bcd   : > { %v3614_v17 = vpop.eup %3613 }
0x1bce   : > { %v2603_v18 = vsel %vm1055_vm4, %v3614_v17, 0.0 }
0x1bcf   : > { %2604 = vadd.xlane.f32.xlu0 %v2603_v18  ;;  %v3527_v18 = vld [vmem:[%s4303_s17 + $0x38] sm:$0xff]  }
0x1beb   : > { %v2528_v8 = vpop.f32.mrf.mxu1 }
0x1bec   : > { %v2535_v19 = vadd.f32 %v2528_v8, %v4150_v24  ;;  %v3152_v24 = vld [vmem:[%s4297_s11 + $0x1c] sm:$0xf]  ;;  %v3528_v8 = vld [vmem:[%s4303_s17 + $0x30] sm:$0xff]  }
0x1bed   : > { %v3450_v20 = vpop.f32.mrf.mxu1 }
0x1bee   : > { %v3530_v20 = vld [vmem:[%s4303_s17 + $0x20] sm:$0xff]  }
0x1bef   : > { %v2531_v21 = vpop.f32.mrf.mxu1 }
0x1bf0   : > { %v2536_v22 = vadd.f32 %v2531_v21, %v4152_v27  ;;  %v2663_v27 = vsel %vm1252_vm5, %v3152_v24, 0  ;;  %v3176_v21 = vld [vmem:[%s4302_s16 + $0x1] ss:$0 sm:$0xff] }
0x1bf1   : > { %v3451_v25 = vpop.f32.mrf.mxu1  ;;  %3465 = vmatpush3.bf16.msra.mxu0 %v2663_v27 }
0x1bf2   : > { %3478 = vmatprep.subr.bf16.mxu0 %v3643_v15 }
0x1c54   : > { %v2602_v26 = vpop.xlane.xlu0 %2601 }
0x1c55   : > { %3615 = vrcp.f32 %v2602_v26 }
0x1c58   : > { %v2605_v29 = vpop.xlane.xlu0 %2604 }
0x1c59   : > { %3617 = vrcp.f32 %v2605_v29 }
0x1c62   : > { %v3616_v30 = vpop.eup %3615 }
0x1c63   : > { %v2608_v32 = vmul.f32 %v3616_v30, %v3612_v14 }
0x1c66   : > { %v3618_v31 = vpop.eup %3617 }
0x1c67   : > { %v2609_v33 = vmul.f32 %v3618_v31, %v3614_v17 }
0x1c69   : > { %v2610_v34 = vpack.c.bf16 %v2609_v33, %v2608_v32 }
0x1c6b   : > { %3461 = vmatmul.mubr.msk.bf16.vlgmr.msra.gmra.mxu1 %vm1055_vm4, %v2610_v34 }
0x1c6c   : > { %3474 = vmatprep.mubr.msk.bf16.mxu1 %vm3644_vm1, %v3643_v15  ;;  %3471 = vmatpush3.bf16.msra.mxu1 %v3525_v63 }
0x1c6d   : > { %3472 = vmatprep.subr.bf16.mxu1 %v3643_v15 }
0x1c70   : > { %3473 = vmatpush3.bf16.msra.mxu1 %v3526_v1 }
0x1d2b   : > { %v2651_v35 = vpop.f32.mrf.mxu1 }
0x1d2d   : > { %v3462_v36 = vpop.f32.mrf.mxu1 }
0x1d2f   : > { %v2654_v37 = vpop.f32.mrf.mxu1 }
0x1d30   : > { %v2658_v38 = vpack.c.bf16 %v2654_v37, %v2651_v35 }
0x1d31   : > { %v3463_v23 = vpop.f32.mrf.mxu1 }
0x1d32   : > { %3467 = vmatmul.mubr.msk.bf16.vlgmr.msra.gmra.mxu0 %vm1007_vm3, %v2658_v38 }
0x1d33   : > { %3486 = vmatprep.mubr.msk.bf16.mxu0 %vm3644_vm1, %v3643_v15  ;;  %3479 = vmatpush3.bf16.msra.mxu0 %v3527_v18 }
0x1d34   : > { %3480 = vmatprep.subr.bf16.mxu0 %v3643_v15 }
0x1d37   : > { %3481 = vmatpush3.bf16.msra.mxu0 %v3528_v8 }
0x1d38   : > { %3482 = vmatprep.subr.bf16.mxu0 %v3643_v15 }
0x1df2   : > { %v2699_v39 = vpop.f32.mrf.mxu0 }
0x1df3   : > { %v2706_v40 = vadd.f32 %v2699_v39, %v2535_v19  ;;  %v3529_v19 = vld [vmem:[%s4303_s17 + $0x28] sm:$0xff]  }
0x1df4   : > { %v3468_v28 = vpop.f32.mrf.mxu0  ;;  %3483 = vmatpush3.bf16.msra.mxu0 %v3529_v19 }
0x1df5   : > { %v2708_v42 = vadd.f32 %v2706_v40, %v4056_v6  ;;  %3484 = vmatprep.subr.bf16.mxu0 %v3643_v15 }
0x1df6   : > { %v2702_v43 = vpop.f32.mrf.mxu0 }
0x1df7   : > { %v4205_v44 = vadd.f32 %v3166_v41, %v2708_v42  ;;  %v2707_v45 = vadd.f32 %v2702_v43, %v2536_v22 }
0x1df8   : > { %v3469_v47 = vpop.f32.mrf.mxu0  ;;  %3485 = vmatpush3.bf16.msra.mxu0 %v3530_v20 }
0x1df9   : > { %v2709_v48 = vadd.f32 %v2707_v45, %v4061_v11  ;;  %v2724_v49 = vsel %vm846_vm2, %v4205_v44, 0.0 }
0x1dfa   : > { %2725 = vadd.xlane.f32.xlu0 %v2724_v49  ;;  %v3194_v49 = vld [vmem:[%s4304_s18 + $0x1] ss:$0 sm:$0xff] }
0x1dfb   : > { %v4210_v50 = vadd.f32 %v3166_v41, %v2709_v48 }
0x1dfd   : > { %v2727_v51 = vsel %vm846_vm2, %v4210_v50, 0.0 }
0x1dfe   : > { %2728 = vadd.xlane.f32.xlu0 %v2727_v51 }
0x1e83   : > { %v2726_v52 = vpop.xlane.xlu0 %2725 }
0x1e84   : > { %v2730_v53 = vmul.f32 0.03125, %v2726_v52 }
0x1e86   : > { %v2732_v6 = vsub.f32 %v4205_v44, %v2730_v53 }
0x1e87   : > { %v2729_v54 = vpop.xlane.xlu0 %2728 }
0x1e88   : > { %v2731_v55 = vmul.f32 0.03125, %v2729_v54  ;;  %v2734_v56 = vmul.f32 %v2732_v6, %v2732_v6 }
0x1e8a   : > { %v2733_v58 = vsub.f32 %v4210_v50, %v2731_v55  ;;  %v2736_v11 = vsel %vm846_vm2, %v2734_v56, 0.0 }
0x1e8b   : > { %2737 = vadd.xlane.f32.xlu0 %v2736_v11 }
0x1e8c   : > { %v2735_v60 = vmul.f32 %v2733_v58, %v2733_v58 }
0x1e8e   : > { %v2739_v61 = vsel %vm846_vm2, %v2735_v60, 0.0 }
0x1e8f   : > { %2740 = vadd.xlane.f32.xlu0 %v2739_v61 }
0x1f14   : > { %v2738_v2 = vpop.xlane.xlu0 %2737 }
0x1f15   : > { %v2742_v3 = vmul.f32 0.03125, %v2738_v2 }
0x1f17   : > { %v2744_v4 = vadd.f32 1e-05, %v2742_v3 }
0x1f18   : > { %v2741_v5 = vpop.xlane.xlu0 %2740 }
0x1f19   : > { %3619 = vrsqrt.f32 %v2744_v4  ;;  %v2743_v7 = vmul.f32 0.03125, %v2741_v5 }
0x1f1b   : > { %v2745_v46 = vadd.f32 1e-05, %v2743_v7 }
0x1f1d   : > { %3621 = vrsqrt.f32 %v2745_v46 }
0x1f26   : > { %v3620_v57 = vpop.eup %3619 }
0x1f27   : > { %v2748_v62 = vmul.f32 %v3620_v57, %v2732_v6 }
0x1f29   : > { %v2756_v10 = vmul.f32 %v3169_v9, %v2748_v62 }
0x1f2a   : > { %v3622_v59 = vpop.eup %3621 }
0x1f2b   : > { %v2749_v0 = vmul.f32 %v3622_v59, %v2733_v58  ;;  %v2764_v14 = vadd.f32 %v3170_v12, %v2756_v10  ;;  %v3195_v10 = vld [vmem:[%s4305_s19] ss:$0 sm:$0xff] }
0x1f2d   : > { %v2757_v13 = vmul.f32 %v3169_v9, %v2749_v0 }
0x1f2f   : > { %v2765_v16 = vadd.f32 %v3170_v12, %v2757_v13  ;;  %v3196_v13 = vld [vmem:[%s4306_s20] ss:$0 sm:$0xff] }
0x1f31   : > { %v2771_v17 = vpack.c.bf16 %v2765_v16, %v2764_v14 }
0x1f33   : > { %3475 = vmatmul.mubr.msk.bf16.vlgmr.msra.gmra.mxu1 %vm846_vm2, %v2771_v17 }
0x1ff3   : > { %v2829_v22 = vpop.f32.mrf.mxu1 }
0x1ff4   : > { %v2830_v25 = vadd.f32 %v3176_v21, %v2829_v22 }
0x1ff5   : > { %v3476_v26 = vpop.f32.mrf.mxu1 }
0x1ff6   : > { %v2838_v29 = vmul.f32 0.044715, %v2830_v25  ;;  %v2836_v41 = vmul.f32 0.5, %v2830_v25 }
0x1ff7   : > { %v2832_v30 = vpop.f32.mrf.mxu1 }
0x1ff8   : > { %v2840_v31 = vmul.f32 %v2838_v29, %v2830_v25  ;;  %v2833_v32 = vadd.f32 %v3176_v21, %v2832_v30 }
0x1ff9   : > { %v3477_v33 = vpop.f32.mrf.mxu1 }
0x1ffa   : > { %v2842_v34 = vmul.f32 %v2840_v31, %v2830_v25  ;;  %v2839_v24 = vmul.f32 0.044715, %v2833_v32  ;;  %v2837_v28 = vmul.f32 0.5, %v2833_v32 }
0x1ffc   : > { %v2844_v27 = vadd.f32 %v2842_v34, %v2830_v25  ;;  %v2841_v35 = vmul.f32 %v2839_v24, %v2833_v32 }
0x1ffe   : > { %v2846_v36 = vmul.f32 0.7978846, %v2844_v27  ;;  %v2843_v37 = vmul.f32 %v2841_v35, %v2833_v32 }
0x2000   : > { %3623 = vtanh.f32 %v2846_v36  ;;  %v2845_v15 = vadd.f32 %v2843_v37, %v2833_v32 }
0x2002   : > { %v2847_v38 = vmul.f32 0.7978846, %v2845_v15 }
0x2004   : > { %3625 = vtanh.f32 %v2847_v38 }
0x200d   : > { %v3624_v23 = vpop.eup %3623 }
0x200e   : > { %v2850_v39 = vadd.f32 1.0, %v3624_v23 }
0x2010   : > { %v2852_v43 = vmul.f32 %v2850_v39, %v2836_v41  ;;  %v3197_v39 = vld [vmem:[%s4307_s21] ss:$0 sm:$0xff] }
0x2011   : > { %v3626_v40 = vpop.eup %3625  ;;  %v3198_v41 = vld [vmem:[%s4308_s22] ss:$0 sm:$0xff] }
0x2012   : > { %v2851_v42 = vadd.f32 1.0, %v3626_v40 }
0x2014   : > { %v2853_v45 = vmul.f32 %v2851_v42, %v2837_v28 }
0x2016   : > { %v2863_v47 = vpack.c.bf16 %v2853_v45, %v2852_v43 }
0x2018   : > { %3487 = vmatmul.mubr.msk.bf16.vlgmr.msra.gmra.mxu0 %vm716_vm0, %v2863_v47 }
0x20d8   : > { %v2925_v48 = vpop.f32.mrf.mxu0 }
0x20d9   : > { %v2932_v51 = vadd.f32 %v2925_v48, %v4205_v44 }
0x20da   : > { %v3488_v52 = vpop.f32.mrf.mxu0 }
0x20db   : > { %v2942_v53 = vadd.f32 %v3194_v49, %v2932_v51 }
0x20dc   : > { %v2928_v6 = vpop.f32.mrf.mxu0 }
0x20dd   : > { %v2933_v54 = vadd.f32 %v2928_v6, %v4210_v50  ;;  %v2946_v55 = vsel %vm846_vm2, %v2942_v53, 0.0 }
0x20de   : > { %2947 = vadd.xlane.f32.xlu1 %v2946_v55  ;;  %v3489_v56 = vpop.f32.mrf.mxu0 }
0x20df   : > { %v2943_v58 = vadd.f32 %v3194_v49, %v2933_v54 }
0x20e1   : > { %v2949_v11 = vsel %vm846_vm2, %v2943_v58, 0.0 }
0x20e2   : > { %2950 = vadd.xlane.f32.xlu0 %v2949_v11 }
0x2167   : > { %v2948_v60 = vpop.xlane.xlu1 %2947 }
0x2168   : > { %v2952_v61 = vmul.f32 0.03125, %v2948_v60 }
0x216a   : > { %v2954_v63 = vsub.f32 %v2942_v53, %v2952_v61 }
0x216b   : > { %v2951_v1 = vpop.xlane.xlu0 %2950 }
0x216c   : > { %v2953_v2 = vmul.f32 0.03125, %v2951_v1  ;;  %v2956_v3 = vmul.f32 %v2954_v63, %v2954_v63 }
0x216e   : > { %v2955_v44 = vsub.f32 %v2943_v58, %v2953_v2  ;;  %v2958_v4 = vsel %vm846_vm2, %v2956_v3, 0.0 }
0x216f   : > { %2959 = vadd.xlane.f32.xlu0 %v2958_v4 }
0x2170   : > { %v2957_v5 = vmul.f32 %v2955_v44, %v2955_v44 }
0x2172   : > { %v2961_v50 = vsel %vm846_vm2, %v2957_v5, 0.0 }
0x2173   : > { %2962 = vadd.xlane.f32.xlu0 %v2961_v50 }
0x21f8   : > { %v2960_v7 = vpop.xlane.xlu0 %2959 }
0x21f9   : > { %v2964_v46 = vmul.f32 0.03125, %v2960_v7 }
0x21fb   : > { %v2966_v57 = vadd.f32 1e-05, %v2964_v46 }
0x21fc   : > { %v2963_v62 = vpop.xlane.xlu0 %2962 }
0x21fd   : > { %3627 = vrsqrt.f32 %v2966_v57  ;;  %v2965_v9 = vmul.f32 0.03125, %v2963_v62 }
0x21ff   : > { %v2967_v59 = vadd.f32 1e-05, %v2965_v9 }
0x2201   : > { %3629 = vrsqrt.f32 %v2967_v59 }
0x220a   : > { %v3628_v0 = vpop.eup %3627 }
0x220b   : > { %v2970_v12 = vmul.f32 %v3628_v0, %v2954_v63 }
0x220d   : > { %v2978_v14 = vmul.f32 %v3195_v10, %v2970_v12 }
0x220e   : > { %v3630_v16 = vpop.eup %3629 }
0x220f   : > { %v2986_v17 = vadd.f32 %v3196_v13, %v2978_v14  ;;  %v2971_v18 = vmul.f32 %v3630_v16, %v2955_v44 }
0x2211   : > { %v2990_v8 = vsel %vm846_vm2, %v2986_v17, 0.0  ;;  %v2979_v19 = vmul.f32 %v3195_v10, %v2971_v18 }
0x2212   : > { %2991 = vadd.xlane.f32.xlu0 %v2990_v8 }
0x2213   : > { %v2987_v20 = vadd.f32 %v3196_v13, %v2979_v19 }
0x2215   : > { %v2993_v21 = vsel %vm846_vm2, %v2987_v20, 0.0 }
0x2216   : > { %2994 = vadd.xlane.f32.xlu0 %v2993_v21 }
0x229b   : > { %v2992_v22 = vpop.xlane.xlu0 %2991 }
0x229c   : > { %v2996_v25 = vmul.f32 0.03125, %v2992_v22 }
0x229e   : > { %v2998_v26 = vsub.f32 %v2986_v17, %v2996_v25 }
0x229f   : > { %v2995_v29 = vpop.xlane.xlu0 %2994 }
0x22a0   : > { %v2997_v30 = vmul.f32 0.03125, %v2995_v29  ;;  %v3000_v31 = vmul.f32 %v2998_v26, %v2998_v26 }
0x22a2   : > { %v2999_v32 = vsub.f32 %v2987_v20, %v2997_v30  ;;  %v3002_v33 = vsel %vm846_vm2, %v3000_v31, 0.0 }
0x22a3   : > { %3003 = vadd.xlane.f32.xlu0 %v3002_v33 }
0x22a4   : > { %v3001_v34 = vmul.f32 %v2999_v32, %v2999_v32 }
0x22a6   : > { %v3005_v24 = vsel %vm846_vm2, %v3001_v34, 0.0 }
0x22a7   : > { %3006 = vadd.xlane.f32.xlu0 %v3005_v24 }
0x232c   : > { %v3004_v27 = vpop.xlane.xlu0 %3003 }
0x232d   : > { %v3008_v35 = vmul.f32 0.03125, %v3004_v27 }
0x232f   : > { %v3010_v36 = vadd.f32 1e-05, %v3008_v35 }
0x2330   : > { %v3007_v37 = vpop.xlane.xlu0 %3006 }
0x2331   : > { %3631 = vrsqrt.f32 %v3010_v36  ;;  %v3009_v15 = vmul.f32 0.03125, %v3007_v37 }
0x2333   : > { %v3011_v38 = vadd.f32 1e-05, %v3009_v15 }
0x2335   : > { %3633 = vrsqrt.f32 %v3011_v38 }
0x233e   : > { %v3632_v23 = vpop.eup %3631 }
0x233f   : > { %v3014_v40 = vmul.f32 %v3632_v23, %v2998_v26 }
0x2341   : > { %v3022_v28 = vmul.f32 %v3197_v39, %v3014_v40 }
0x2342   : > { %v3634_v42 = vpop.eup %3633 }
0x2343   : > { %v3030_v43 = vadd.f32 %v3198_v41, %v3022_v28  ;;  %v3015_v45 = vmul.f32 %v3634_v42, %v2999_v32 }
0x2345   : > { %3032 = vst.msk [vmem:[%s710_s2] sm:$0xff] %vm846_vm2, %v3030_v43  ;;  %v3023_v47 = vmul.f32 %v3197_v39, %v3015_v45 }
0x2347   : > { %v3031_v48 = vadd.f32 %v3198_v41, %v3023_v47 }
0x2349   : > { %3033 = vst.msk [vmem:[%s710_s2 + $0x8] sm:$0xff] %vm846_vm2, %v3031_v48 }
0x234a PF: > { %s33_s4 = sadd.s32 1, %s3641_s4  }
0x234b   : > { %p30_p4 = scmp.ge.s32.totalorder %s33_s4, 4  }
0x234d   :  { %32 = sbr.rel (!%p30_p4) target bundleno = 9 (0x9), region = 153 }

</bundles_post_ra>
